<compile_context>
chip_gen: v6e
topology: v6e:2x2x1
jax: 0.10.0
libtpu: 0.0.40
codegen_flags: <defaults>
</compile_context>

<pallas_src>
import functools

import jax
import jax.numpy as jnp
from jax import lax
from jax.experimental import pallas as pl
from jax.experimental.pallas import tpu as pltpu


def _sa_kernel(x_ref, wq_ref, wv_ref, bv_ref, wt_ref, bt_ref, o_ref,
               q16_ref, xva_ref, acc_ref, *, tq, bf16_exp):
    """Grid = (batch, query-block).  x_ref/o_ref: (C, N), resident across q."""
    C, N = x_ref.shape
    C_aug = acc_ref.shape[0]                   # C + pad; row C is the ones-row
    qi = pl.program_id(1)

    # ---- once per batch element: 1x1 convs (bf16 operands, f32 accumulate) ----
    @pl.when(qi == 0)
    def _init():
        x16 = x_ref[...].astype(jnp.bfloat16)
        q16_ref[...] = jnp.dot(wq_ref[...].astype(jnp.bfloat16), x16,
                               preferred_element_type=jnp.float32
                               ).astype(jnp.bfloat16)                 # (C4, N)
        xva_ref[0:C, :] = (jnp.dot(wv_ref[...].astype(jnp.bfloat16), x16,
                                   preferred_element_type=jnp.float32)
                           + bv_ref[...])                             # Wv x + bv
        # Augmented rows: row C = 1 (yields column sums of p from the MXU),
        # remaining pad rows = 0.
        row = lax.broadcasted_iota(jnp.int32, (C_aug - C, N), 0)
        xva_ref[C:C_aug, :] = jnp.where(row == 0, 1.0, 0.0).astype(jnp.float32)
        acc_ref[...] = jnp.zeros_like(acc_ref)

    # ---- energy for this query block against the full key axis ----
    q0 = pl.multiple_of(qi * tq, tq)
    q_blk = q16_ref[:, pl.ds(q0, tq)]                                 # (C4, tq)
    energy = lax.dot_general(q_blk, q16_ref[...],
                             dimension_numbers=(((0,), (0,)), ((), ())),
                             preferred_element_type=jnp.float32)      # (tq, N)

    # ---- exact row softmax (full key axis present); no f32 p materialized ----
    m_row = jnp.max(energy, axis=-1, keepdims=True)                   # (tq, 1)
    if bf16_exp:
        # bf16 EUP exp on v6e/v7x; no separate e->bf16 cast pass afterwards.
        e16 = jnp.exp((energy - m_row).astype(jnp.bfloat16))          # (tq, N)
        row_sum = jnp.sum(e16, axis=-1, keepdims=True, dtype=jnp.float32)
    else:
        e = jnp.exp(energy - m_row)                                   # f32 (v5e)
        row_sum = jnp.sum(e, axis=-1, keepdims=True)
        e16 = e.astype(jnp.bfloat16)
    r16 = pl.reciprocal(row_sum, approx=True).astype(jnp.bfloat16)    # (tq, 1)
    p16 = e16 * r16                                                   # row-normed

    # ---- xr and column sums in ONE bf16 MXU matmul via the augmented xv ----
    lhs16 = xva_ref[:, pl.ds(q0, tq)].astype(jnp.bfloat16)            # (C_aug, tq)
    acc_ref[...] += jnp.dot(lhs16, p16, preferred_element_type=jnp.float32)

    # ---- finalize: column renorm, trans_conv (+folded BN), ReLU, residual ----
    @pl.when(qi == pl.num_programs(1) - 1)
    def _done():
        x = x_ref[...].astype(jnp.float32)
        col = acc_ref[C:C + 1, :]                                     # (1, N)
        xr = acc_ref[0:C, :] * pl.reciprocal(1e-9 + col, approx=True)
        t = jnp.dot(wt_ref[...].astype(jnp.bfloat16),
                    (x - xr).astype(jnp.bfloat16),
                    preferred_element_type=jnp.float32) + bt_ref[...]
        o_ref[...] = (x + jnp.maximum(t, 0.0)).astype(o_ref.dtype)


def _use_bf16_exp():
    try:
        kind = jax.devices()[0].device_kind.lower()
    except Exception:
        return False
    return ("v6" in kind) or ("v7" in kind)


def _vmem_budget_bytes():
    try:
        cap = int(pltpu.get_tpu_info().vmem_capacity_bytes)
    except Exception:
        cap = 0
    if cap <= 0:
        return 48 << 20                        # safe on every generation
    if cap <= (64 << 20):                      # v7x-class: leave I/O headroom
        return cap - (16 << 20)
    return min(cap - (28 << 20), 100 << 20)    # v5e / v6e (128 MiB physical)


def sa_layer(x_bcn, wq, wv, bv, wt, bt, gamma, beta, rmean, rvar,
             eps=1e-5, tq=None):
    """x_bcn: (B, C, N) float32 (PyTorch Conv1d layout). Returns (B, C, N)."""
    B, C, N = x_bcn.shape
    C4 = wq.shape[0]
    if N % 128 != 0:
        raise ValueError("N must be a multiple of 128 (lane-dense tiles); "
                         "pad + mask keys for other sizes.")
    if tq is None:
        tq = next(t for t in (512, 256, 128) if t <= N and N % t == 0)
    assert N % tq == 0 and tq % 128 == 0

    c_aug = ((C + 1 + 7) // 8) * 8             # xv rows + column-sum row, 8-aligned

    # Fold eval-mode BatchNorm affine into the trans_conv weight/bias.
    scale = gamma * lax.rsqrt(rvar + eps)
    wt_f = scale[:, None] * wt
    bt_f = (bt - rmean) * scale + beta

    # VMEM: size from the actual live set (+20%), clamp to a per-chip budget,
    # shrinking tq if needed.
    budget = _vmem_budget_bytes()

    def live_bytes(tq_):
        scratch = 2 * C4 * N + 2 * 4 * c_aug * N          # q16 + xv_aug + acc
        block = tq_ * N * (4 + 2 + 4)                     # energy f32 + e bf16 + temp
        io = 2 * 2 * C * N * 4                            # double-buffered in/out
        w = 4 * (C4 * C + 2 * C * C + 2 * C)
        return int(1.2 * (scratch + block + io + w)) + (1 << 20)

    while live_bytes(tq) > budget and tq > 128:
        tq //= 2
    vmem_limit = int(min(max(live_bytes(tq), 32 << 20), budget))

    kernel = functools.partial(_sa_kernel, tq=tq, bf16_exp=_use_bf16_exp())

    grid_spec = pltpu.PrefetchScalarGridSpec(
        num_scalar_prefetch=0,
        grid=(B, N // tq),
        in_specs=[
            pl.BlockSpec((None, C, N), lambda b, q: (b, 0, 0)),  # x (resident over q)
            pl.BlockSpec((C4, C), lambda b, q: (0, 0)),          # Wq (shared q/k)
            pl.BlockSpec((C, C), lambda b, q: (0, 0)),           # Wv
            pl.BlockSpec((C, 1), lambda b, q: (0, 0)),           # bv
            pl.BlockSpec((C, C), lambda b, q: (0, 0)),           # Wt (BN folded)
            pl.BlockSpec((C, 1), lambda b, q: (0, 0)),           # bt (BN folded)
        ],
        out_specs=pl.BlockSpec((None, C, N), lambda b, q: (b, 0, 0)),
        scratch_shapes=[
            pltpu.VMEM((C4, N), jnp.bfloat16),     # q = Wq x (energy operand)
            pltpu.VMEM((c_aug, N), jnp.float32),   # [Wv x + bv ; 1 ; 0...]
            pltpu.VMEM((c_aug, N), jnp.float32),   # [xr accumulator ; col sums]
        ],
    )

    return pl.pallas_call(
        kernel,
        out_shape=jax.ShapeDtypeStruct((B, C, N), x_bcn.dtype),
        grid_spec=grid_spec,
        compiler_params=pltpu.CompilerParams(
            dimension_semantics=("parallel", "arbitrary"),
            vmem_limit_bytes=vmem_limit,
        ),
    )(x_bcn, wq, wv, bv.reshape(C, 1), wt_f, bt_f.reshape(C, 1))


def sa_layer_ref(x, wq, wv, bv, wt, bt, gamma, beta, rmean, rvar, eps=1e-5):
    """Pure-JAX f32 reference mirroring the PyTorch forward (eval-mode BN)."""
    xq = jnp.einsum('oc,bcn->bon', wq, x).transpose(0, 2, 1)     # (B, N, C4)
    xk = jnp.einsum('oc,bcn->bon', wq, x)                        # (B, C4, N)
    xv = jnp.einsum('oc,bcn->bon', wv, x) + bv[None, :, None]    # (B, C, N)
    energy = xq @ xk
    att = jax.nn.softmax(energy, axis=-1)
    att = att / (1e-9 + att.sum(axis=1, keepdims=True))
    xr = xv @ att
    t = jnp.einsum('oc,bcn->bon', wt, x - xr) + bt[None, :, None]
    bn = ((t - rmean[None, :, None]) * lax.rsqrt(rvar[None, :, None] + eps)
          * gamma[None, :, None] + beta[None, :, None])
    return x + jnp.maximum(bn, 0.0)


if __name__ == "__main__":
    B, C, N = 2, 32, 256        # N multiple of 128 -> lane-dense tiles
    C4 = C // 4

    key = jax.random.PRNGKey(0)
    ks = jax.random.split(key, 10)
    x = jax.random.normal(ks[0], (B, C, N), jnp.float32)

    # Deterministic synthetic parameters (Conv1d 1x1 weights squeezed to 2-D).
    wq = jax.random.normal(ks[1], (C4, C), jnp.float32) * 0.1   # shared q/k weight
    wv = jax.random.normal(ks[2], (C, C), jnp.float32) * 0.1
    bv = jax.random.normal(ks[3], (C,), jnp.float32) * 0.1
    wt = jax.random.normal(ks[4], (C, C), jnp.float32) * 0.1
    bt = jax.random.normal(ks[5], (C,), jnp.float32) * 0.1
    gamma = jnp.ones((C,), jnp.float32) + 0.05 * jax.random.normal(ks[6], (C,))
    beta = 0.05 * jax.random.normal(ks[7], (C,), jnp.float32)
    rmean = 0.05 * jax.random.normal(ks[8], (C,), jnp.float32)
    rvar = 1.0 + 0.1 * jnp.abs(jax.random.normal(ks[9], (C,), jnp.float32))

    # tq=128 -> two query blocks per batch element: exercises the accumulator
    # init / accumulate / finalize path, not just the degenerate single step.
    out = sa_layer(x, wq, wv, bv, wt, bt, gamma, beta, rmean, rvar, tq=128)
    out = jax.block_until_ready(out)

    ref = sa_layer_ref(x, wq, wv, bv, wt, bt, gamma, beta, rmean, rvar)
    assert out.shape == (B, C, N)
    # bf16 MXU operands, bf16 exp (v6e+/v7x) and approx reciprocals vs an
    # all-f32 reference.
    assert jnp.allclose(out, ref, rtol=3e-2, atol=3e-2), "mismatch vs reference"

    print("KERNEL_OK")
</pallas_src>

<mosaic_0001>
module attributes {stable_mosaic.version = 11 : i64} {
  func.func @_sa_kernel(%arg0: i32, %arg1: i32, %arg2: memref<1x32x256xf32, #tpu.memory_space<vmem>>, %arg3: memref<8x32xf32, #tpu.memory_space<vmem>>, %arg4: memref<32x32xf32, #tpu.memory_space<vmem>>, %arg5: memref<32x1xf32, #tpu.memory_space<vmem>>, %arg6: memref<32x32xf32, #tpu.memory_space<vmem>>, %arg7: memref<32x1xf32, #tpu.memory_space<vmem>>, %arg8: memref<1x32x256xf32, #tpu.memory_space<vmem>>, %arg9: memref<8x256xbf16, #tpu.memory_space<vmem>>, %arg10: memref<40x256xf32, #tpu.memory_space<vmem>>, %arg11: memref<40x256xf32, #tpu.memory_space<vmem>>) attributes {dimension_semantics = [#tpu.dimension_semantics<parallel>, #tpu.dimension_semantics<arbitrary>], iteration_bounds = array<i64: 2, 2>, scalar_prefetch = 0 : i64, scratch_operands = 3 : i64, tpu.core_type = #tpu.core_type<tc>, window_params = [{transform_indices = @transform_0, window_bounds = array<i64: 1, 32, 256>}, {pipeline_mode = #tpu.pipeline_mode<synchronous>, transform_indices = @transform_1, window_bounds = array<i64: 8, 32>}, {pipeline_mode = #tpu.pipeline_mode<synchronous>, transform_indices = @transform_2, window_bounds = array<i64: 32, 32>}, {pipeline_mode = #tpu.pipeline_mode<synchronous>, transform_indices = @transform_3, window_bounds = array<i64: 32, 1>}, {pipeline_mode = #tpu.pipeline_mode<synchronous>, transform_indices = @transform_4, window_bounds = array<i64: 32, 32>}, {pipeline_mode = #tpu.pipeline_mode<synchronous>, transform_indices = @transform_5, window_bounds = array<i64: 32, 1>}, {transform_indices = @transform_6, window_bounds = array<i64: 1, 32, 256>}]} {
    %c0_i32 = arith.constant 0 : i32
    %0 = arith.cmpi eq, %arg1, %c0_i32 : i32
    %1 = arith.extui %0 : i1 to i32
    %c0_i32_0 = arith.constant 0 : i32
    %2 = arith.cmpi ne, %1, %c0_i32_0 : i32
    scf.if %2 {
      %c0_12 = arith.constant 0 : index
      %c0_13 = arith.constant 0 : index
      %c0_14 = arith.constant 0 : index
      %31 = vector.load %arg2[%c0_12, %c0_13, %c0_14] : memref<1x32x256xf32, #tpu.memory_space<vmem>>, vector<1x32x256xf32>
      %32 = vector.shape_cast %31 : vector<1x32x256xf32> to vector<32x256xf32>
      %33 = arith.truncf %32 : vector<32x256xf32> to vector<32x256xbf16>
      %c0_15 = arith.constant 0 : index
      %c0_16 = arith.constant 0 : index
      %34 = vector.load %arg3[%c0_15, %c0_16] : memref<8x32xf32, #tpu.memory_space<vmem>>, vector<8x32xf32>
      %35 = arith.truncf %34 : vector<8x32xf32> to vector<8x32xbf16>
      %cst_17 = arith.constant dense<0.000000e+00> : vector<8x256xf32>
      %36 = tpu.matmul %35, %33, %cst_17 {dimension_numbers = #tpu.dot_dimension_numbers<[1], [0], [0], [1], [0, 0, 1, 1], [], []>} : vector<8x32xbf16>, vector<32x256xbf16>, vector<8x256xf32> -> vector<8x256xf32>
      %37 = arith.truncf %36 : vector<8x256xf32> to vector<8x256xbf16>
      %c0_18 = arith.constant 0 : index
      %c0_19 = arith.constant 0 : index
      %38 = vector.load %arg9[%c0_18, %c0_19] : memref<8x256xbf16, #tpu.memory_space<vmem>>, vector<8x256xbf16>
      tpu.vector_store %arg9[%c0_18, %c0_19], %37 {strides = array<i32>} : memref<8x256xbf16, #tpu.memory_space<vmem>>, vector<8x256xbf16>,
      %c0_20 = arith.constant 0 : index
      %c0_21 = arith.constant 0 : index
      %39 = vector.load %arg4[%c0_20, %c0_21] : memref<32x32xf32, #tpu.memory_space<vmem>>, vector<32x32xf32>
      %40 = arith.truncf %39 : vector<32x32xf32> to vector<32x32xbf16>
      %cst_22 = arith.constant dense<0.000000e+00> : vector<32x256xf32>
      %41 = tpu.matmul %40, %33, %cst_22 {dimension_numbers = #tpu.dot_dimension_numbers<[1], [0], [0], [1], [0, 0, 1, 1], [], []>} : vector<32x32xbf16>, vector<32x256xbf16>, vector<32x256xf32> -> vector<32x256xf32>
      %c0_23 = arith.constant 0 : index
      %c0_24 = arith.constant 0 : index
      %42 = vector.load %arg5[%c0_23, %c0_24] : memref<32x1xf32, #tpu.memory_space<vmem>>, vector<32x1xf32>
      %43 = vector.broadcast %42 : vector<32x1xf32> to vector<32x256xf32>
      %44 = arith.addf %41, %43 : vector<32x256xf32>
      %c0_25 = arith.constant 0 : index
      %c0_26 = arith.constant 0 : index
      %45 = vector.load %arg10[%c0_25, %c0_26] : memref<40x256xf32, #tpu.memory_space<vmem>>, vector<32x256xf32>
      tpu.vector_store %arg10[%c0_25, %c0_26], %44 {strides = array<i32>} : memref<40x256xf32, #tpu.memory_space<vmem>>, vector<32x256xf32>,
      %46 = tpu.iota {dimensions = array<i32: 0>} : vector<8x256xi32>
      %c0_i32_27 = arith.constant 0 : i32
      %47 = vector.broadcast %c0_i32_27 : i32 to vector<8x256xi32>
      %48 = arith.cmpi eq, %46, %47 : vector<8x256xi32>
      %cst_28 = arith.constant 1.000000e+00 : f32
      %cst_29 = arith.constant 0.000000e+00 : f32
      %49 = vector.broadcast %cst_28 : f32 to vector<8x256xf32>
      %50 = vector.broadcast %cst_29 : f32 to vector<8x256xf32>
      %51 = arith.select %48, %49, %50 : vector<8x256xi1>, vector<8x256xf32>
      %c32 = arith.constant 32 : index
      %c0_30 = arith.constant 0 : index
      %52 = vector.load %arg10[%c32, %c0_30] : memref<40x256xf32, #tpu.memory_space<vmem>>, vector<8x256xf32>
      tpu.vector_store %arg10[%c32, %c0_30], %51 {strides = array<i32>} : memref<40x256xf32, #tpu.memory_space<vmem>>, vector<8x256xf32>,
      %cst_31 = arith.constant 0.000000e+00 : f32
      %53 = vector.broadcast %cst_31 : f32 to vector<40x256xf32>
      %c0_32 = arith.constant 0 : index
      %c0_33 = arith.constant 0 : index
      %54 = vector.load %arg11[%c0_32, %c0_33] : memref<40x256xf32, #tpu.memory_space<vmem>>, vector<40x256xf32>
      tpu.vector_store %arg11[%c0_32, %c0_33], %53 {strides = array<i32>} : memref<40x256xf32, #tpu.memory_space<vmem>>, vector<40x256xf32>,
    } else {
    }
    %c128_i32 = arith.constant 128 : i32
    %3 = arith.muli %arg1, %c128_i32 : i32
    %4 = tpu.assume_multiple %3, 128 : i32
    %c0 = arith.constant 0 : index
    %5 = arith.index_cast %4 : i32 to index
    %6 = vector.load %arg9[%c0, %5] : memref<8x256xbf16, #tpu.memory_space<vmem>>, vector<8x128xbf16>
    %c0_1 = arith.constant 0 : index
    %c0_2 = arith.constant 0 : index
    %7 = vector.load %arg9[%c0_1, %c0_2] : memref<8x256xbf16, #tpu.memory_space<vmem>>, vector<8x256xbf16>
    %cst = arith.constant dense<0.000000e+00> : vector<128x256xf32>
    %8 = tpu.matmul %6, %7, %cst {dimension_numbers = #tpu.dot_dimension_numbers<[0], [0], [1], [1], [0, 1, 1, 1], [], []>} : vector<8x128xbf16>, vector<8x256xbf16>, vector<128x256xf32> -> vector<128x256xf32>
    %cst_3 = arith.constant dense<0xFF800000> : vector<128xf32>
    %9 = vector.multi_reduction <maximumf>, %8, %cst_3 [1] : vector<128x256xf32> to vector<128xf32>
    %10 = vector.shape_cast %9 : vector<128xf32> to vector<128x1xf32>
    %11 = vector.broadcast %10 : vector<128x1xf32> to vector<128x256xf32>
    %12 = arith.subf %8, %11 : vector<128x256xf32>
    %13 = math.exp %12 : vector<128x256xf32>
    %cst_4 = arith.constant dense<0.000000e+00> : vector<128xf32>
    %14 = vector.multi_reduction <add>, %13, %cst_4 [1] : vector<128x256xf32> to vector<128xf32>
    %15 = vector.shape_cast %14 : vector<128xf32> to vector<128x1xf32>
    %16 = arith.truncf %13 : vector<128x256xf32> to vector<128x256xbf16>
    %17 = tpu.reciprocal %15 {approx = true} : vector<128x1xf32> -> vector<128x1xf32>
    %18 = arith.truncf %17 : vector<128x1xf32> to vector<128x1xbf16>
    %19 = vector.broadcast %18 : vector<128x1xbf16> to vector<128x256xbf16>
    %20 = arith.mulf %16, %19 : vector<128x256xbf16>
    %c0_5 = arith.constant 0 : index
    %21 = arith.index_cast %4 : i32 to index
    %22 = vector.load %arg10[%c0_5, %21] : memref<40x256xf32, #tpu.memory_space<vmem>>, vector<40x128xf32>
    %23 = arith.truncf %22 : vector<40x128xf32> to vector<40x128xbf16>
    %c0_6 = arith.constant 0 : index
    %c0_7 = arith.constant 0 : index
    %24 = vector.load %arg11[%c0_6, %c0_7] : memref<40x256xf32, #tpu.memory_space<vmem>>, vector<40x256xf32>
    %cst_8 = arith.constant dense<0.000000e+00> : vector<40x256xf32>
    %25 = tpu.matmul %23, %20, %cst_8 {dimension_numbers = #tpu.dot_dimension_numbers<[1], [0], [0], [1], [0, 0, 1, 1], [], []>} : vector<40x128xbf16>, vector<128x256xbf16>, vector<40x256xf32> -> vector<40x256xf32>
    %26 = arith.addf %24, %25 : vector<40x256xf32>
    %c0_9 = arith.constant 0 : index
    %c0_10 = arith.constant 0 : index
    %27 = vector.load %arg11[%c0_9, %c0_10] : memref<40x256xf32, #tpu.memory_space<vmem>>, vector<40x256xf32>
    tpu.vector_store %arg11[%c0_9, %c0_10], %26 {strides = array<i32>} : memref<40x256xf32, #tpu.memory_space<vmem>>, vector<40x256xf32>,
    %c1_i32 = arith.constant 1 : i32
    %28 = arith.cmpi eq, %arg1, %c1_i32 : i32
    %29 = arith.extui %28 : i1 to i32
    %c0_i32_11 = arith.constant 0 : i32
    %30 = arith.cmpi ne, %29, %c0_i32_11 : i32
    scf.if %30 {
      %c0_12 = arith.constant 0 : index
      %c0_13 = arith.constant 0 : index
      %c0_14 = arith.constant 0 : index
      %31 = vector.load %arg2[%c0_12, %c0_13, %c0_14] : memref<1x32x256xf32, #tpu.memory_space<vmem>>, vector<1x32x256xf32>
      %32 = vector.shape_cast %31 : vector<1x32x256xf32> to vector<32x256xf32>
      %c32 = arith.constant 32 : index
      %c0_15 = arith.constant 0 : index
      %33 = vector.load %arg11[%c32, %c0_15] : memref<40x256xf32, #tpu.memory_space<vmem>>, vector<1x256xf32>
      %c0_16 = arith.constant 0 : index
      %c0_17 = arith.constant 0 : index
      %34 = vector.load %arg11[%c0_16, %c0_17] : memref<40x256xf32, #tpu.memory_space<vmem>>, vector<32x256xf32>
      %cst_18 = arith.constant 9.99999971E-10 : f32
      %35 = vector.broadcast %cst_18 : f32 to vector<1x256xf32>
      %36 = arith.addf %35, %33 : vector<1x256xf32>
      %37 = tpu.reciprocal %36 {approx = true} : vector<1x256xf32> -> vector<1x256xf32>
      %38 = vector.broadcast %37 : vector<1x256xf32> to vector<32x256xf32>
      %39 = arith.mulf %34, %38 : vector<32x256xf32>
      %c0_19 = arith.constant 0 : index
      %c0_20 = arith.constant 0 : index
      %40 = vector.load %arg6[%c0_19, %c0_20] : memref<32x32xf32, #tpu.memory_space<vmem>>, vector<32x32xf32>
      %41 = arith.truncf %40 : vector<32x32xf32> to vector<32x32xbf16>
      %42 = arith.subf %32, %39 : vector<32x256xf32>
      %43 = arith.truncf %42 : vector<32x256xf32> to vector<32x256xbf16>
      %cst_21 = arith.constant dense<0.000000e+00> : vector<32x256xf32>
      %44 = tpu.matmul %41, %43, %cst_21 {dimension_numbers = #tpu.dot_dimension_numbers<[1], [0], [0], [1], [0, 0, 1, 1], [], []>} : vector<32x32xbf16>, vector<32x256xbf16>, vector<32x256xf32> -> vector<32x256xf32>
      %c0_22 = arith.constant 0 : index
      %c0_23 = arith.constant 0 : index
      %45 = vector.load %arg7[%c0_22, %c0_23] : memref<32x1xf32, #tpu.memory_space<vmem>>, vector<32x1xf32>
      %46 = vector.broadcast %45 : vector<32x1xf32> to vector<32x256xf32>
      %47 = arith.addf %44, %46 : vector<32x256xf32>
      %cst_24 = arith.constant 0.000000e+00 : f32
      %48 = vector.broadcast %cst_24 : f32 to vector<32x256xf32>
      %49 = arith.maximumf %47, %48 : vector<32x256xf32>
      %50 = arith.addf %32, %49 : vector<32x256xf32>
      %c0_25 = arith.constant 0 : index
      %c0_26 = arith.constant 0 : index
      %c0_27 = arith.constant 0 : index
      %51 = vector.load %arg8[%c0_25, %c0_26, %c0_27] : memref<1x32x256xf32, #tpu.memory_space<vmem>>, vector<1x32x256xf32>
      %52 = vector.shape_cast %51 : vector<1x32x256xf32> to vector<32x256xf32>
      %53 = vector.shape_cast %50 : vector<32x256xf32> to vector<1x32x256xf32>
      tpu.vector_store %arg8[%c0_25, %c0_26, %c0_27], %53 {strides = array<i32>} : memref<1x32x256xf32, #tpu.memory_space<vmem>>, vector<1x32x256xf32>,
    } else {
    }
    return
  }
  func.func @transform_0(%arg0: i32, %arg1: i32) -> (i32, i32, i32) {
    %c0_i32 = arith.constant 0 : i32
    %c0_i32_0 = arith.constant 0 : i32
    %c0_i32_1 = arith.constant 0 : i32
    return %arg0, %c0_i32, %c0_i32_0 : i32, i32, i32
  }
  func.func @transform_1(%arg0: i32, %arg1: i32) -> (i32, i32) {
    %c0_i32 = arith.constant 0 : i32
    %c0_i32_0 = arith.constant 0 : i32
    %c0_i32_1 = arith.constant 0 : i32
    return %c0_i32, %c0_i32_0 : i32, i32
  }
  func.func @transform_2(%arg0: i32, %arg1: i32) -> (i32, i32) {
    %c0_i32 = arith.constant 0 : i32
    %c0_i32_0 = arith.constant 0 : i32
    %c0_i32_1 = arith.constant 0 : i32
    return %c0_i32, %c0_i32_0 : i32, i32
  }
  func.func @transform_3(%arg0: i32, %arg1: i32) -> (i32, i32) {
    %c0_i32 = arith.constant 0 : i32
    %c0_i32_0 = arith.constant 0 : i32
    %c0_i32_1 = arith.constant 0 : i32
    return %c0_i32, %c0_i32_0 : i32, i32
  }
  func.func @transform_4(%arg0: i32, %arg1: i32) -> (i32, i32) {
    %c0_i32 = arith.constant 0 : i32
    %c0_i32_0 = arith.constant 0 : i32
    %c0_i32_1 = arith.constant 0 : i32
    return %c0_i32, %c0_i32_0 : i32, i32
  }
  func.func @transform_5(%arg0: i32, %arg1: i32) -> (i32, i32) {
    %c0_i32 = arith.constant 0 : i32
    %c0_i32_0 = arith.constant 0 : i32
    %c0_i32_1 = arith.constant 0 : i32
    return %c0_i32, %c0_i32_0 : i32, i32
  }
  func.func @transform_6(%arg0: i32, %arg1: i32) -> (i32, i32, i32) {
    %c0_i32 = arith.constant 0 : i32
    %c0_i32_0 = arith.constant 0 : i32
    %c0_i32_1 = arith.constant 0 : i32
    return %arg0, %c0_i32, %c0_i32_0 : i32, i32, i32
  }
}

</mosaic_0001>

<bundles_post_ra>
// kernel: tpu_custom_call.1
= control target key start
LH: loop header
LB: loop body
LE: loop exit
PB: predicated region body
PF: predicated region fallthrough
CT: control target
= control target key end

     0   :  { %s2333_s0 = inlined_call_operand.hbm [shape: f32[2,32,256], index: 0, kind: input, shape index: {}]   ;;  %s2334_s1 = inlined_call_operand.hbm [shape: f32[8,32], index: 1, kind: input, shape index: {}]   ;;  %s2335_s2 = inlined_call_operand.vmem [shape: f32[32,32], index: 2, kind: input, shape index: {}]   ;;  %s2336_s3 = inlined_call_operand.vmem [shape: f32[32,1], index: 3, kind: input, shape index: {}]   ;;  %s2337_s4 = inlined_call_operand.vmem [shape: f32[32,32], index: 4, kind: input, shape index: {}]   ;;  %s2338_s5 = inlined_call_operand.vmem [shape: f32[32,1], index: 5, kind: input, shape index: {}]   ;;  %s2339_s6 = inlined_call_operand.hbm [shape: f32[2,32,256], index: 6, kind: output, shape index: {}]  }
   0x1   :  { %2345 = sst [smem:[#allocation17_spill]] %s2334_s1 }
   0x2   :  { %11 = vsyncpa [#allocation6], 0 }
   0x3   :  { %13 = vsyncpa [#allocation6 + $0x1], 0 }
   0x4   :  { %14 = vsyncpa [#allocation9], 0 }
   0x5   :  { %15 = vsyncpa [#allocation7], 0 }
   0x6   :  { %17 = vsyncpa [#allocation7 + $0x1], 0  ;;  %s1733_s21 = smov 0   ;;  %s1735_s22 = smov 0  }
   0x7   :  { %s1737_s23 = smov 0   ;;  %s1739_s24 = smov 0  }
   0x8   :  { %s1741_s25 = smov 0   ;;  %s1743_s26 = smov 0  }
   0x9   :  { %s1745_s27 = smov 0   ;;  %s1747_s28 = smov 0  }
   0xa LB: > { %2346 = sst [smem:[#allocation14_spill]] %s1677_s26  ;;  %s1284_s29 = sadd.s32 4294967295, %s1685_s28   ;;  %s1685_s28 = sphi %s1747_s28, %s23_s28   ;;  %s1681_s27 = sphi %s1745_s27, %s2370_s27   ;;  %s1677_s26 = sphi %s1743_s26, %s2365_s26   ;;  %s1673_s25 = sphi %s1741_s25, %s2369_s25   ;;  %s1669_s24 = sphi %s1739_s24, %s2364_s24   ;;  %s1665_s23 = sphi %s1737_s23, %s2368_s23   ;;  %s1661_s22 = sphi %s1735_s22, %s2367_s22   ;;  %s1657_s21 = sphi %s1733_s21, %s2366_s21  }
   0xb   : > { %s1285_s30 = sadd.s32 4294967294, %s1685_s28   ;;  %p49_p0 = scmp.ne.s32.totalorder %s1665_s23, %s1661_s22 }
   0xc   : > { %p50_p1 = scmp.eq.s32.totalorder %s1685_s28, 0  ;;  %p55_p2 = scmp.ne.s32.totalorder %s1661_s22, %s1657_s21 }
   0xd   : > { %p1781_p3 = scmp.eq.s32.totalorder %s1284_s29, 0  ;;  %p184_p4 = scmp.eq.s32.totalorder %s1284_s29, 3 }
   0xe   : > { %p1785_p5 = por %p50_p1, %p49_p0  ;;  %p190_p6 = scmp.eq.s32.totalorder %s1285_s30, 3 }
   0xf   : > { %p1791_p7 = por %p1781_p3, %p55_p2  ;;  %p1795_p8 = por %p184_p4, %p49_p0 }
  0x10   : > { %p1799_p9 = por %p190_p6, %p55_p2  ;;  %p1286_p10 = scmp.ge.s32.totalorder %s1685_s28, 1 }
  0x11   : > { %s2349_s10 = scalar_select %p1791_p7, 1, 0 }
  0x12   : > { %s2350_s11 = scalar_select %p1795_p8, 1, 0 }
  0x13   : > { %s2351_s12 = scalar_select %p1799_p9, 1, 0 }
  0x14   : > { %p197_p11 = scmp.lt.s32.totalorder %s1685_s28, 5  ;;  %s1687_s14 = smov [#allocation8]  }
  0x15   : > { %2352 = sst [smem:[#allocation15_spill]] %s2351_s12  ;;  %s210_s15 = sshll.u32 %s1687_s14, 4  ;;  %s211_s15 = int_to_ptr.vmem [resolvable:$true] %s210_s15 }
  0x16   : > { %p1805_p12 = pnand %p1286_p10, %p197_p11  ;;  %p1351_p13 = scmp.lt.s32.totalorder %s1685_s28, 4 }
  0x17   : > { %s32_s17 = sadd.s32 1, %s1677_s26  ;;  %s1542_s18 = scalar_lea.vmem %s211_s15, 128 }
  0x18   : > { %s2353_s13 = scalar_select %p1805_p12, 1, 0 }
  0x19   : > { %p1338_p0 = pneg %p1805_p12  ;;  %p1814_p1 = pnand %p1351_p13, %p1785_p5 }
  0x1a   : > { %p1543_p6 = scmp.ne.s32.totalorder %s211_s15, %s1542_s18  ;;  %p1550_p9 = scmp.lt.s32.totalorder %s211_s15, %s211_s15 }
  0x1b   : > { %p1339_p2 = pnand %p1338_p0, %p1781_p3  ;;  %p1551_p8 = scmp.lt.s32.totalorder %s1542_s18, %s1542_s18 }
  0x1d   : > { %p1533_p4 = pneg %p1339_p2  ;;  %p1552_p7 = por %p1551_p8, %p1550_p9 }
  0x1f   : > { %p1545_p10 = pnand %p1543_p6, %p1533_p4 }
  0x21   : > { %p1546_p11 = pneg %p1545_p10 }
  0x23   : > { %p1553_p12 = pnand %p1552_p7, %p1546_p11 }
  0x25   : > { %1556 = shalt.err (!%p1553_p12)
}
  0x26   : > { %s2355_s1 = sld [smem:[#allocation17_spill]]  ;;  %p33_p5 = scmp.ge.s32.totalorder %s32_s17, 2 }
  0x27   : > { %s35_s29 = sadd.s32 1, %s1681_s27  ;;  %s233_s30 = sand.u32 1, %s1665_s23  }
  0x28   : > { %s1323_s9 = sshll.u32 %s1681_s27, 10  ;;  %s2372_s17 = smov (%p33_p5, %s32_s17), 0 }
  0x29   : > { %2356 = sst [smem:[#allocation16_spill]] %s2372_s17  ;;  %s2374_s29 = smov (!%p33_p5, %s35_s29), %s1681_s27 }
  0x2a   : > { %s1289_s14 = sshll.u32 %s233_s30, 6  ;;  %p37_p7 = scmp.ge.s32.totalorder %s2374_s29, 2 }
  0x2b   : > { %s243_s19 = scalar_lea.hbm %s2333_s0, %s1323_s9  ;;  %s237_s20 = scalar_lea.vmem [#allocation5], %s1289_s14 }
  0x2c   : > { %1341 = dma.hbm_to_vmem [thread:$0]  (!%p1339_p2), %s2355_s1, 128, %s211_s15, [#allocation9]  }
  0x2d   : > { %s244_s26 = sshll.u32 %s237_s20, 4  ;;  %s2376_s29 = smov (%p37_p7, %s2374_s29), 0  ;;  %s245_s26 = int_to_ptr.vmem [resolvable:$true] %s244_s26 }
  0x2e   : > { %s39_s15 = ssub.s32 %s1681_s27, %s2376_s29  ;;  %s234_s12 = scalar_lea.sflag [#allocation6], %s233_s30 }
  0x2f   : > { %p1837_p8 = scmp.eq.s32.totalorder %s39_s15, 0  ;;  %p1559_p9 = pneg %p1814_p1 }
  0x30   : > { %s1570_s17 = scalar_lea.vmem %s245_s26, 1024  ;;  %s1688_s7 = smov [#allocation5]  }
  0x31   : > { %p1571_p12 = scmp.ne.s32.totalorder %s245_s26, %s1570_s17  ;;  %s1575_s9 = sshll.u32 %s1688_s7, 4  ;;  %s1576_s9 = int_to_ptr.vmem [resolvable:$false] %s1575_s9 }
  0x32   : > { %s1577_s14 = scalar_lea.vmem %s1576_s9, 2048  ;;  %p1578_p2 = scmp.lt.s32.totalorder %s245_s26, %s1576_s9 }
  0x33   : > { %p1573_p13 = pnand %p1571_p12, %p1559_p9  ;;  %p1579_p4 = scmp.lt.s32.totalorder %s1577_s14, %s1570_s17 }
  0x35   : > { %p1574_p0 = pneg %p1573_p13  ;;  %p1580_p6 = por %p1579_p4, %p1578_p2 }
  0x37   : > { %p1581_p10 = pnand %p1580_p6, %p1574_p0 }
  0x39   : > { %1584 = shalt.err (!%p1581_p10)
}
  0x3a   : > { %s1689_s18 = smov 256   ;;  %s1690_s30 = smov 16  }
  0x3b   : > { %1345 = dma.hbm_to_vmem [thread:$0]  (!%p1814_p1), %s243_s19, 1024, %s245_s26, %s234_s12, %s1689_s18, %s1689_s18, %s1690_s30  }
  0x3c   : > { %s2358_s20 = sadd.s32 1, %s1665_s23  ;;  %p2359_p11 = scmp.ne.s32.totalorder %s2353_s13, 0 }
  0x3d   : > { %s1850_s15 = scalar_select %p1837_p8, %s1665_s23, %s2358_s20  }
  0x3e   : > { %256 = sbr.rel (%p2359_p11) target bundleno = 1500 (0x5dc), region = 44  ;;  %s1855_s17 = sand.u32 (!%p2359_p11), 1, %s1661_s22  }
  0x3f   : > { %s1293_s7 = sshll.u32 (!%p2359_p11), %s1855_s17, 6  ;;  %s259_s9 = scalar_lea.sflag (!%p2359_p11), [#allocation6], %s1855_s17 }
  0x40   : > { %s1859_s14 = scalar_lea.vmem (!%p2359_p11), [#allocation5], %s1293_s7  ;;  %p2360_p5 = scmp.ne.s32.totalorder (!%p2359_p11), %s2349_s10, 0 }
  0x43   : > { %1644 = dma.done.wait (%p2360_p5), %s259_s9, 1024  }
  0x44   : > { %1646 = vsyncadd (%p2360_p5), %s259_s9, 4294966272 }
  0x45   : > { %1648 = dma.done.wait (%p1781_p3), [#allocation9], 128  }
  0x46   : > { %1650 = vsyncadd (%p1781_p3), [#allocation9], 4294967168  ;;  %s1869_s1 = scalar_lea.vmem [#allocation10], %s1293_s7  ;;  %p1296_p1 = scmp.ne.s32.totalorder %s1669_s24, 0 }
  0x48   : > { %299 = sbr.rel (%p1296_p1) target bundleno = 298 (0x12a), region = 56 }
  0x4d   : > { %v305_v0 = vld [vmem:[%s1859_s14 + $0x28] sm:$0xff]  ;;  %v307_v1 = vld [vmem:[%s1859_s14 + $0x38] sm:$0xff]  ;;  %v304_v2 = vld [vmem:[%s1859_s14 + $0x20] sm:$0xff]  ;;  %v1691_v7 = vmov 0   ;;  %vm314_vm0 = vcmask 261120   ;;  %v465_v25 = vlaneseq  ;;  %v1692_v27 = vmov 0.0  }
  0x4e   : > { %v311_v3 = vpack.c.bf16 %v307_v1, %v305_v0  ;;  %v306_v4 = vld [vmem:[%s1859_s14 + $0x30] sm:$0xff]  ;;  %v301_v5 = vld [vmem:[%s1859_s14 + $0x8] sm:$0xff]  ;;  %v303_v6 = vld [vmem:[%s1859_s14 + $0x18] sm:$0xff]  ;;  %436 = vmatprep.mubr.bf16.mxu1 %v1691_v7  ;;  %350 = vmatprep.mubr.bf16.mxu0 %v1691_v7  ;;  %471 = vst [vmem:[#allocation4] sm:$0xff] %v1692_v27 }
  0x4f   : > { %v310_v8 = vpack.c.bf16 %v306_v4, %v304_v2  ;;  %v309_v9 = vpack.c.bf16 %v303_v6, %v301_v5  ;;  %v300_v10 = vld [vmem:[%s1859_s14] sm:$0xff]  ;;  %v302_v11 = vld [vmem:[%s1859_s14 + $0x10] sm:$0xff]  ;;  %1427 = vset.pattern.permute.xlu0 %v1691_v7  ;;  %1428 = vset.pattern.permute.xlu1 %v1691_v7  ;;  %v368_v12 = vld [vmem:[%s2335_s2] sm:$0xff]  ;;  %v466_v26 = vshrl.u32 %v465_v25, 7  ;;  %472 = vst [vmem:[#allocation4 + $0x8] sm:$0xff] %v1692_v27 }
  0x50   : > { %416 = vmatprep.subr.bf16.mxu1 %v311_v3  ;;  %330 = vmatprep.subr.bf16.mxu0 %v311_v3  ;;  %v308_v13 = vpack.c.bf16 %v302_v11, %v300_v10  ;;  %v369_v14 = vld [vmem:[%s2335_s2 + $0x8] sm:$0xff]  ;;  %v374_v16 = vld [vmem:[%s2336_s3] sm:$0xff]  ;;  %v376_v17 = vld [vmem:[%s2336_s3 + $0x10] sm:$0xff]  ;;  %473 = vst [vmem:[#allocation4 + $0x10] sm:$0xff] %v1692_v27 }
  0x51   : > { %417 = vmatpush1.bf16.msra.mxu1 %v310_v8  ;;  %331 = vmatpush1.bf16.msra.mxu0 %v310_v8  ;;  %v312_v15 = vld [vmem:[#allocation8] sm:$0xff]  ;;  %v372_v18 = vpack.c.bf16 %v369_v14, %v368_v12  ;;  %v377_v21 = vld [vmem:[%s2336_s3 + $0x18] sm:$0xff]  ;;  %v370_v22 = vld [vmem:[%s2335_s2 + $0x10] sm:$0xff]  ;;  %vm467_vm1 = vcmp.eq.s32.totalorder %v466_v26, 0  ;;  %474 = vst [vmem:[#allocation4 + $0x18] sm:$0xff] %v1692_v27 }
  0x52   : > { %418 = vmatprep.subr.bf16.mxu1 %v309_v9  ;;  %332 = vmatprep.subr.bf16.mxu0 %v309_v9  ;;  %v313_v19 = vpack.c.bf16 %v312_v15, %v312_v15  ;;  %v375_v20 = vld [vmem:[%s2336_s3 + $0x8] sm:$0xff]  ;;  %v371_v23 = vld [vmem:[%s2335_s2 + $0x18] sm:$0xff]  ;;  %v468_v28 = vsel %vm467_vm1, 1.0, %v1692_v27  ;;  %475 = vst [vmem:[#allocation4 + $0x20] sm:$0xff] %v1692_v27  ;;  %476 = vst [vmem:[#allocation4 + $0x28] sm:$0xff] %v1692_v27 }
  0x53   : > { %380 = vperm.xlu0 %1427, %v374_v16   ;;  %390 = vperm.xlu1 %1428, %v376_v17   ;;  %v373_v24 = vpack.c.bf16 %v371_v23, %v370_v22  ;;  %477 = vst [vmem:[#allocation4 + $0x30] sm:$0xff] %v1692_v27  ;;  %478 = vst [vmem:[#allocation4 + $0x38] sm:$0xff] %v1692_v27 }
  0x54   : > { %479 = vst [vmem:[#allocation4 + $0x40] sm:$0xff] %v1692_v27  ;;  %480 = vst [vmem:[#allocation4 + $0x48] sm:$0xff] %v1692_v27 }
  0x55   : > { %419 = vmatpush1.bf16.msra.mxu1 %v308_v13  ;;  %333 = vmatpush1.bf16.msra.mxu0 %v308_v13  ;;  %469 = vst [vmem:[#allocation3 + $0x40] sm:$0xff] %v468_v28  ;;  %470 = vst [vmem:[#allocation3 + $0x48] sm:$0xff] %v468_v28 }
  0x57   : > { %385 = vperm.xlu0 %1427, %v375_v20   ;;  %395 = vperm.xlu1 %1428, %v377_v21  }
  0x58   : > { %1299 = vmatmul.mubr.msk.bf16.vlgmr.msra.gmra.mxu1 %vm314_vm0, %v372_v18  ;;  %1297 = vmatmul.mubr.msk.bf16.vlgmr.msra.gmra.mxu0 %vm314_vm0, %v313_v19 }
  0x59   : > { %446 = vmatprep.mubr.bf16.mxu1 %v1691_v7 }
  0x60   : > { %1300 = vmatmul.mubr.msk.bf16.gmra.mxu1 %vm314_vm0, %v373_v24 }
  0xce   : > { %v381_v29 = vpop.permute.xlu0 %380  ;;  %v391_v41 = vpop.permute.xlu1 %390 }
  0xd2   : > { %v386_v33 = vpop.permute.xlu0 %385  ;;  %v396_v49 = vpop.permute.xlu1 %395 }
 0x118   : > { %v438_v30 = vpop.f32.mrf.mxu1  ;;  %v352_v31 = vpop.f32.mrf.mxu0 }
 0x119   : > { %v439_v32 = vadd.f32 %v438_v30, %v381_v29 }
 0x11a   : > { %v440_v34 = vpop.f32.mrf.mxu1  ;;  %v354_v35 = vpop.f32.mrf.mxu0 }
 0x11b   : > { %457 = vst [vmem:[#allocation3] sm:$0xff] %v439_v32  ;;  %v441_v36 = vadd.f32 %v440_v34, %v381_v29  ;;  %v1324_v37 = vpack.c.bf16 %v354_v35, %v352_v31 }
 0x11c   : > { %v442_v38 = vpop.f32.mrf.mxu1  ;;  %v356_v39 = vpop.f32.mrf.mxu0 }
 0x11d   : > { %458 = vst [vmem:[#allocation3 + $0x8] sm:$0xff] %v441_v36  ;;  %v443_v40 = vadd.f32 %v442_v38, %v386_v33  ;;  %367 = vst [vmem:[#allocation2] sm:$0xff] %v1324_v37 }
 0x11e   : > { %v444_v42 = vpop.f32.mrf.mxu1  ;;  %v357_v43 = vpop.f32.mrf.mxu0 }
 0x11f   : > { %459 = vst [vmem:[#allocation3 + $0x10] sm:$0xff] %v443_v40  ;;  %v445_v44 = vadd.f32 %v444_v42, %v386_v33 }
 0x120   : > { %v448_v45 = vpop.f32.mrf.mxu1 }
 0x121   : > { %460 = vst [vmem:[#allocation3 + $0x18] sm:$0xff] %v445_v44  ;;  %v449_v46 = vadd.f32 %v448_v45, %v391_v41 }
 0x122   : > { %v450_v47 = vpop.f32.mrf.mxu1 }
 0x123   : > { %461 = vst [vmem:[#allocation3 + $0x20] sm:$0xff] %v449_v46  ;;  %v451_v48 = vadd.f32 %v450_v47, %v391_v41 }
 0x124   : > { %v452_v50 = vpop.f32.mrf.mxu1 }
 0x125   : > { %462 = vst [vmem:[#allocation3 + $0x28] sm:$0xff] %v451_v48  ;;  %v453_v51 = vadd.f32 %v452_v50, %v396_v49 }
 0x126   : > { %v454_v52 = vpop.f32.mrf.mxu1 }
 0x127   : > { %463 = vst [vmem:[#allocation3 + $0x30] sm:$0xff] %v453_v51  ;;  %v455_v53 = vadd.f32 %v454_v52, %v396_v49 }
 0x129   : > { %464 = vst [vmem:[#allocation3 + $0x38] sm:$0xff] %v455_v53 }
 0x12a PF: > { %s1301_s13 = sshll.u32 %s1669_s24, 7  ;;  %v487_v54 = vld [vmem:[#allocation2] sm:$0xff]  ;;  %vm534_vm2 = vcmask 1043456   ;;  %v1693_v57 = vmov 0   ;;  %vm509_vm3 = vcmask 64512   ;;  %p1315_p3 = scmp.ne.s32.totalorder %s1669_s24, 1 }
 0x12b   : > { %s1905_s16 = sshra.s32 %s1301_s13, 7  ;;  %v1304_v55 = vcombine.high %v487_v54, %v487_v54  ;;  %v1303_v56 = vcombine.low %v487_v54, %v487_v54  ;;  %573 = vmatprep.mubr.bf16.mxu0 %v1693_v57  ;;  %954 = vmatprep.mubr.bf16.mxu1 %v1693_v57 }
 0x12c   : > { %s1302_s19 = sshll.u32 %s1905_s16, 2  ;;  %s1314_s30 = sshll.u32 %s1905_s16, 3 }
 0x12d   : > { %1305 = vmatprep.subr.msk.bf16.mxu0 %vm534_vm2, %v1304_v55  ;;  %v536_v58 = vsel %vm534_vm2, %v1303_v56, 0  ;;  %s485_s18 = scalar_lea.vmem [#allocation2], %s1302_s19  ;;  %s903_s20 = scalar_lea.vmem [#allocation3], %s1314_s30 }
 0x12e   : > { %v486_v59 = vld [vmem:[%s485_s18] sm:$0xf]  ;;  %556 = vmatpush1.bf16.msra.mxu0 %v536_v58 }
 0x12f   : > { %488 = vxpose.xlu0.c.b16.start.end [1/1] (short) %v486_v59, 128 }
 0x191   : > { %v496_v60 = vpop.trf.xlu0 }
 0x192   : > { %1306 = vmatmul.mubr.msk.bf16.vlgmr.msra.gmra.mxu0 %vm509_vm3, %v496_v60 }
 0x193   : > { %583 = vmatprep.mubr.bf16.mxu0 %v1693_v57 }
 0x195   : > { %v497_v61 = vpop.trf.xlu0 }
 0x199   : > { %v498_v62 = vpop.trf.xlu0 }
 0x19a   : > { %1307 = vmatmul.mubr.msk.bf16.gmra.mxu0 %vm509_vm3, %v497_v61 }
 0x19b   : > { %593 = vmatprep.mubr.bf16.mxu0 %v1693_v57 }
 0x19d   : > { %v499_v63 = vpop.trf.xlu0 }
 0x1a1   : > { %v500_v0 = vpop.trf.xlu0 }
 0x1a2   : > { %1308 = vmatmul.mubr.msk.bf16.gmra.mxu0 %vm509_vm3, %v498_v62 }
 0x1a3   : > { %603 = vmatprep.mubr.bf16.mxu0 %v1693_v57 }
 0x1a5   : > { %v501_v1 = vpop.trf.xlu0 }
 0x1a9   : > { %v502_v2 = vpop.trf.xlu0 }
 0x1aa   : > { %1309 = vmatmul.mubr.msk.bf16.gmra.mxu0 %vm509_vm3, %v499_v63 }
 0x1ab   : > { %613 = vmatprep.mubr.bf16.mxu0 %v1693_v57 }
 0x1ad   : > { %v503_v3 = vpop.trf.xlu0 }
 0x1b2   : > { %1310 = vmatmul.mubr.msk.bf16.gmra.mxu0 %vm509_vm3, %v500_v0 }
 0x1b3   : > { %623 = vmatprep.mubr.bf16.mxu0 %v1693_v57 }
 0x1ba   : > { %1311 = vmatmul.mubr.msk.bf16.gmra.mxu0 %vm509_vm3, %v501_v1 }
 0x1bb   : > { %633 = vmatprep.mubr.bf16.mxu0 %v1693_v57 }
 0x1c2   : > { %1312 = vmatmul.mubr.msk.bf16.gmra.mxu0 %vm509_vm3, %v502_v2 }
 0x1c3   : > { %643 = vmatprep.mubr.bf16.mxu0 %v1693_v57 }
 0x1ca   : > { %1313 = vmatmul.mubr.msk.bf16.gmra.mxu0 %vm509_vm3, %v503_v3 }
 0x252   : > { %v1925_v4 = vpop.f32.mrf.mxu0 }
 0x254   : > { %v1927_v5 = vpop.f32.mrf.mxu0 }
 0x255   : > { %v654_v51 = vmax.f32 %v1925_v4, %v1927_v5 }
 0x256   : > { %v1929_v6 = vpop.f32.mrf.mxu0 }
 0x258   : > { %v1931_v7 = vpop.f32.mrf.mxu0 }
 0x259   : > { %v657_v42 = vmax.f32 %v1929_v6, %v1931_v7 }
 0x25a   : > { %v1933_v8 = vpop.f32.mrf.mxu0 }
 0x25c   : > { %v1935_v9 = vpop.f32.mrf.mxu0 }
 0x25d   : > { %v660_v50 = vmax.f32 %v1933_v8, %v1935_v9 }
 0x25e   : > { %v1937_v10 = vpop.f32.mrf.mxu0 }
 0x260   : > { %v1939_v11 = vpop.f32.mrf.mxu0 }
 0x261   : > { %v663_v39 = vmax.f32 %v1937_v10, %v1939_v11 }
 0x262   : > { %v1941_v12 = vpop.f32.mrf.mxu0 }
 0x264   : > { %v1943_v13 = vpop.f32.mrf.mxu0 }
 0x265   : > { %v666_v48 = vmax.f32 %v1941_v12, %v1943_v13 }
 0x266   : > { %v1945_v14 = vpop.f32.mrf.mxu0 }
 0x268   : > { %v1947_v15 = vpop.f32.mrf.mxu0 }
 0x269   : > { %v669_v49 = vmax.f32 %v1945_v14, %v1947_v15 }
 0x26a   : > { %v1949_v16 = vpop.f32.mrf.mxu0 }
 0x26c   : > { %v1951_v17 = vpop.f32.mrf.mxu0 }
 0x26d   : > { %v672_v46 = vmax.f32 %v1949_v16, %v1951_v17 }
 0x26e   : > { %v1953_v18 = vpop.f32.mrf.mxu0 }
 0x270   : > { %v1955_v19 = vpop.f32.mrf.mxu0 }
 0x271   : > { %v675_v47 = vmax.f32 %v1953_v18, %v1955_v19 }
 0x272   : > { %v1957_v20 = vpop.f32.mrf.mxu0 }
 0x274   : > { %v1959_v21 = vpop.f32.mrf.mxu0 }
 0x275   : > { %v678_v41 = vmax.f32 %v1957_v20, %v1959_v21 }
 0x276   : > { %v1961_v22 = vpop.f32.mrf.mxu0 }
 0x278   : > { %v1963_v23 = vpop.f32.mrf.mxu0 }
 0x279   : > { %v681_v45 = vmax.f32 %v1961_v22, %v1963_v23 }
 0x27a   : > { %v1965_v24 = vpop.f32.mrf.mxu0 }
 0x27c   : > { %v1967_v25 = vpop.f32.mrf.mxu0 }
 0x27d   : > { %v684_v36 = vmax.f32 %v1965_v24, %v1967_v25 }
 0x27e   : > { %v1969_v26 = vpop.f32.mrf.mxu0 }
 0x280   : > { %v1971_v27 = vpop.f32.mrf.mxu0 }
 0x281   : > { %v687_v38 = vmax.f32 %v1969_v26, %v1971_v27 }
 0x282   : > { %v635_v28 = vpop.f32.mrf.mxu0 }
 0x284   : > { %v637_v29 = vpop.f32.mrf.mxu0 }
 0x285   : > { %v690_v30 = vmax.f32 %v635_v28, %v637_v29 }
 0x286   : > { %v639_v31 = vpop.f32.mrf.mxu0 }
 0x287   : > { %691 = vmax.xlane.f32.xlu1 %v690_v30 }
 0x288   : > { %v641_v32 = vpop.f32.mrf.mxu0 }
 0x289   : > { %v693_v33 = vmax.f32 %v639_v31, %v641_v32 }
 0x28a   : > { %v645_v34 = vpop.f32.mrf.mxu0 }
 0x28b   : > { %694 = vmax.xlane.f32.xlu1 %v693_v33 }
 0x28c   : > { %v647_v35 = vpop.f32.mrf.mxu0 }
 0x28d   : > { %v696_v37 = vmax.f32 %v645_v34, %v647_v35 }
 0x28e   : > { %v1979_v40 = vpop.f32.mrf.mxu0 }
 0x28f   : > { %685 = vmax.xlane.f32.xlu1 %v684_v36  ;;  %697 = vmax.xlane.f32.xlu0 %v696_v37 }
 0x290   : > { %v1985_v43 = vpop.f32.mrf.mxu0 }
 0x291   : > { %v699_v44 = vmax.f32 %v1979_v40, %v1985_v43 }
 0x293   : > { %688 = vmax.xlane.f32.xlu1 %v687_v38  ;;  %664 = vmax.xlane.f32.xlu0 %v663_v39 }
 0x297   : > { %679 = vmax.xlane.f32.xlu1 %v678_v41  ;;  %658 = vmax.xlane.f32.xlu0 %v657_v42 }
 0x29b   : > { %700 = vmax.xlane.f32.xlu1 %v699_v44 }
 0x29f   : > { %682 = vmax.xlane.f32.xlu1 %v681_v45 }
 0x2a3   : > { %673 = vmax.xlane.f32.xlu1 %v672_v46 }
 0x2a7   : > { %676 = vmax.xlane.f32.xlu1 %v675_v47 }
 0x2ab   : > { %667 = vmax.xlane.f32.xlu1 %v666_v48 }
 0x2af   : > { %670 = vmax.xlane.f32.xlu1 %v669_v49 }
 0x2b3   : > { %661 = vmax.xlane.f32.xlu1 %v660_v50 }
 0x2b7   : > { %655 = vmax.xlane.f32.xlu1 %v654_v51 }
 0x310   : > { %v692_v52 = vpop.xlane.xlu1 %691 }
 0x311   : > { %v726_v53 = vsub.f32 %v635_v28, %v692_v52  ;;  %v727_v54 = vsub.f32 %v637_v29, %v692_v52 }
 0x313   : > { %v782_v55 = vmul.f32 1.442695, %v726_v53  ;;  %v784_v56 = vmul.f32 1.442695, %v727_v54 }
 0x314   : > { %v695_v58 = vpop.xlane.xlu1 %694 }
 0x315   : > { %v728_v59 = vsub.f32 %v639_v31, %v695_v58  ;;  %v729_v60 = vsub.f32 %v641_v32, %v695_v58  ;;  %1431 = vpow2.f32 %v782_v55 }
 0x316   : > { %1433 = vpow2.f32 %v784_v56 }
 0x317   : > { %v786_v61 = vmul.f32 1.442695, %v728_v59  ;;  %v788_v62 = vmul.f32 1.442695, %v729_v60 }
 0x318   : > { %v686_v63 = vpop.xlane.xlu1 %685  ;;  %v698_v0 = vpop.xlane.xlu0 %697 }
 0x319   : > { %1435 = vpow2.f32 %v786_v61  ;;  %v722_v1 = vsub.f32 %v1965_v24, %v686_v63  ;;  %v723_v2 = vsub.f32 %v1967_v25, %v686_v63  ;;  %v730_v3 = vsub.f32 %v645_v34, %v698_v0 }
 0x31a   : > { %1437 = vpow2.f32 %v788_v62  ;;  %v731_v28 = vsub.f32 %v647_v35, %v698_v0 }
 0x31b   : > { %v774_v29 = vmul.f32 1.442695, %v722_v1  ;;  %v776_v30 = vmul.f32 1.442695, %v723_v2  ;;  %v790_v33 = vmul.f32 1.442695, %v730_v3 }
 0x31c   : > { %v792_v36 = vmul.f32 1.442695, %v731_v28  ;;  %v689_v31 = vpop.xlane.xlu1 %688  ;;  %v665_v3 = vpop.xlane.xlu0 %664 }
 0x31d   : > { %1439 = vpow2.f32 %v774_v29  ;;  %v724_v32 = vsub.f32 %v1969_v26, %v689_v31  ;;  %v725_v37 = vsub.f32 %v1971_v27, %v689_v31 }
 0x31e   : > { %1441 = vpow2.f32 %v776_v30 }
 0x31f   : > { %1443 = vpow2.f32 %v790_v33  ;;  %v778_v38 = vmul.f32 1.442695, %v724_v32  ;;  %v780_v39 = vmul.f32 1.442695, %v725_v37 }
 0x320   : > { %1445 = vpow2.f32 %v792_v36  ;;  %v680_v24 = vpop.xlane.xlu1 %679 }
 0x321   : > { %1447 = vpow2.f32 %v778_v38  ;;  %v718_v25 = vsub.f32 %v1957_v20, %v680_v24  ;;  %v719_v34 = vsub.f32 %v1959_v21, %v680_v24 }
 0x322   : > { %1449 = vpow2.f32 %v780_v39  ;;  %v2009_v41 = vpop.eup %1431 }
 0x323   : > { %v766_v35 = vmul.f32 1.442695, %v718_v25  ;;  %v768_v42 = vmul.f32 1.442695, %v719_v34  ;;  %v2011_v26 = vpop.eup %1433 }
 0x324   : > { %v701_v44 = vpop.xlane.xlu1 %700  ;;  %v834_v28 = vadd.f32 %v2011_v26, %v2009_v41 }
 0x325   : > { %v732_v27 = vsub.f32 %v1979_v40, %v701_v44  ;;  %v733_v45 = vsub.f32 %v1985_v43, %v701_v44  ;;  %1451 = vpow2.f32 %v766_v35  ;;  %v709_v35 = vsub.f32 %v1939_v11, %v665_v3 }
 0x326   : > { %v2015_v46 = vpop.eup %1435  ;;  %1453 = vpow2.f32 %v768_v42 }
 0x327   : > { %v2017_v47 = vpop.eup %1437  ;;  %v794_v20 = vmul.f32 1.442695, %v732_v27  ;;  %v796_v48 = vmul.f32 1.442695, %v733_v45  ;;  %v858_v21 = vpack.c.bf16 %v2015_v46, %v2009_v41 }
 0x328   : > { %v683_v49 = vpop.xlane.xlu1 %682  ;;  %v859_v50 = vpack.c.bf16 %v2017_v47, %v2011_v26 }
 0x329   : > { %1455 = vpow2.f32 %v794_v20  ;;  %v720_v40 = vsub.f32 %v1961_v22, %v683_v49  ;;  %v721_v43 = vsub.f32 %v1963_v23, %v683_v49 }
 0x32a   : > { %v2025_v51 = vpop.eup %1439  ;;  %1457 = vpow2.f32 %v796_v48 }
 0x32b   : > { %v2027_v52 = vpop.eup %1441  ;;  %v770_v53 = vmul.f32 1.442695, %v720_v40  ;;  %v772_v54 = vmul.f32 1.442695, %v721_v43 }
 0x32c   : > { %v2029_v55 = vpop.eup %1443  ;;  %v674_v56 = vpop.xlane.xlu1 %673  ;;  %v828_v38 = vadd.f32 %v2027_v52, %v2025_v51 }
 0x32d   : > { %v2031_v58 = vpop.eup %1445  ;;  %1459 = vpow2.f32 %v770_v53  ;;  %v714_v59 = vsub.f32 %v1949_v16, %v674_v56  ;;  %v715_v60 = vsub.f32 %v1951_v17, %v674_v56  ;;  %v837_v56 = vadd.f32 %v2017_v47, %v2015_v46 }
 0x32e   : > { %v2035_v22 = vpop.eup %1447  ;;  %1461 = vpow2.f32 %v772_v54  ;;  %v840_v23 = vadd.f32 %v2031_v58, %v2029_v55 }
 0x32f   : > { %v2039_v61 = vpop.eup %1449  ;;  %v758_v62 = vmul.f32 1.442695, %v714_v59  ;;  %v760_v63 = vmul.f32 1.442695, %v715_v60  ;;  %v856_v0 = vpack.c.bf16 %v2035_v22, %v2025_v51 }
 0x330   : > { %841 = vadd.xlane.f32.xlu1 %v840_v23  ;;  %v677_v1 = vpop.xlane.xlu1 %676  ;;  %v857_v16 = vpack.c.bf16 %v2039_v61, %v2027_v52 }
 0x331   : > { %1463 = vpow2.f32 %v758_v62  ;;  %v716_v17 = vsub.f32 %v1953_v18, %v677_v1  ;;  %v717_v2 = vsub.f32 %v1955_v19, %v677_v1  ;;  %v708_v19 = vsub.f32 %v1937_v10, %v665_v3 }
 0x332   : > { %1465 = vpow2.f32 %v760_v63  ;;  %v2049_v33 = vpop.eup %1451  ;;  %v831_v3 = vadd.f32 %v2039_v61, %v2035_v22 }
 0x333   : > { %v762_v29 = vmul.f32 1.442695, %v716_v17  ;;  %v764_v30 = vmul.f32 1.442695, %v717_v2  ;;  %v2051_v31 = vpop.eup %1453  ;;  %v746_v20 = vmul.f32 1.442695, %v708_v19 }
 0x334   : > { %835 = vadd.xlane.f32.xlu1 %v834_v28  ;;  %v668_v36 = vpop.xlane.xlu1 %667  ;;  %v822_v11 = vadd.f32 %v2051_v31, %v2049_v33 }
 0x335   : > { %1467 = vpow2.f32 %v762_v29  ;;  %v710_v32 = vsub.f32 %v1941_v12, %v668_v36  ;;  %v711_v18 = vsub.f32 %v1943_v13, %v668_v36  ;;  %v659_v12 = vpop.xlane.xlu0 %658 }
 0x336   : > { %v2055_v37 = vpop.eup %1455  ;;  %1469 = vpow2.f32 %v764_v30  ;;  %v704_v49 = vsub.f32 %v1929_v6, %v659_v12 }
 0x337   : > { %v2060_v39 = vpop.eup %1457  ;;  %v750_v24 = vmul.f32 1.442695, %v710_v32  ;;  %v752_v25 = vmul.f32 1.442695, %v711_v18  ;;  %v860_v34 = vpack.c.bf16 %v2055_v37, %v2029_v55 }
 0x338   : > { %829 = vadd.xlane.f32.xlu1 %v828_v38  ;;  %v671_v13 = vpop.xlane.xlu1 %670  ;;  %v843_v42 = vadd.f32 %v2060_v39, %v2055_v37  ;;  %v861_v10 = vpack.c.bf16 %v2060_v39, %v2031_v58 }
 0x339   : > { %1471 = vpow2.f32 %v750_v24  ;;  %v712_v44 = vsub.f32 %v1945_v14, %v671_v13  ;;  %v713_v27 = vsub.f32 %v1947_v15, %v671_v13  ;;  %v748_v14 = vmul.f32 1.442695, %v709_v35 }
 0x33a   : > { %v2071_v45 = vpop.eup %1459  ;;  %1473 = vpow2.f32 %v752_v25  ;;  %844 = vadd.xlane.f32.xlu0 %v843_v42  ;;  %v705_v15 = vsub.f32 %v1931_v7, %v659_v12  ;;  %v738_v7 = vmul.f32 1.442695, %v704_v49 }
 0x33b   : > { %v2075_v48 = vpop.eup %1461  ;;  %v754_v40 = vmul.f32 1.442695, %v712_v44  ;;  %v756_v43 = vmul.f32 1.442695, %v713_v27  ;;  %v854_v53 = vpack.c.bf16 %v2071_v45, %v2049_v33 }
 0x33c   : > { %823 = vadd.xlane.f32.xlu1 %v822_v11  ;;  %v662_v54 = vpop.xlane.xlu1 %661  ;;  %v855_v59 = vpack.c.bf16 %v2075_v48, %v2051_v31  ;;  %v740_v17 = vmul.f32 1.442695, %v705_v15  ;;  %v825_v19 = vadd.f32 %v2075_v48, %v2071_v45 }
 0x33d   : > { %1475 = vpow2.f32 %v754_v40  ;;  %v706_v60 = vsub.f32 %v1933_v8, %v662_v54  ;;  %v707_v6 = vsub.f32 %v1935_v9, %v662_v54 }
 0x33e   : > { %v2087_v23 = vpop.eup %1463  ;;  %1477 = vpow2.f32 %v756_v43  ;;  %838 = vadd.xlane.f32.xlu0 %v837_v56 }
 0x33f   : > { %v2089_v62 = vpop.eup %1465  ;;  %1479 = vpow2.f32 %v746_v20  ;;  %v742_v63 = vmul.f32 1.442695, %v706_v60  ;;  %v744_v1 = vmul.f32 1.442695, %v707_v6 }
 0x340   : > { %1481 = vpow2.f32 %v748_v14  ;;  %v656_v2 = vpop.xlane.xlu1 %655  ;;  %v816_v8 = vadd.f32 %v2089_v62, %v2087_v23 }
 0x341   : > { %1483 = vpow2.f32 %v742_v63  ;;  %v702_v9 = vsub.f32 %v1925_v4, %v656_v2  ;;  %v703_v28 = vsub.f32 %v1927_v5, %v656_v2 }
 0x342   : > { %v2097_v29 = vpop.eup %1467  ;;  %1485 = vpow2.f32 %v744_v1  ;;  %832 = vadd.xlane.f32.xlu0 %v831_v3  ;;  %817 = vadd.xlane.f32.xlu1 %v816_v8 }
 0x343   : > { %v2099_v30 = vpop.eup %1469  ;;  %1487 = vpow2.f32 %v738_v7  ;;  %v734_v36 = vmul.f32 1.442695, %v702_v9  ;;  %v736_v32 = vmul.f32 1.442695, %v703_v28  ;;  %v852_v18 = vpack.c.bf16 %v2097_v29, %v2087_v23 }
 0x344   : > { %1489 = vpow2.f32 %v740_v17  ;;  %v853_v4 = vpack.c.bf16 %v2099_v30, %v2089_v62  ;;  %v819_v24 = vadd.f32 %v2099_v30, %v2097_v29 }
 0x345   : > { %1491 = vpow2.f32 %v734_v36 }
 0x346   : > { %v2107_v5 = vpop.eup %1471  ;;  %1493 = vpow2.f32 %v736_v32  ;;  %826 = vadd.xlane.f32.xlu0 %v825_v19 }
 0x347   : > { %v2109_v38 = vpop.eup %1473 }
 0x348   : > { %v810_v25 = vadd.f32 %v2109_v38, %v2107_v5 }
 0x34a   : > { %v2115_v35 = vpop.eup %1475  ;;  %820 = vadd.xlane.f32.xlu0 %v819_v24  ;;  %811 = vadd.xlane.f32.xlu1 %v810_v25 }
 0x34b   : > { %v2117_v12 = vpop.eup %1477  ;;  %v850_v13 = vpack.c.bf16 %v2115_v35, %v2107_v5  ;;  %v904_v5 = vld [vmem:[%s903_s20] sm:$0xff] }
 0x34c   : > { %v2121_v42 = vpop.eup %1479  ;;  %v813_v44 = vadd.f32 %v2117_v12, %v2115_v35  ;;  %v851_v27 = vpack.c.bf16 %v2117_v12, %v2109_v38  ;;  %v905_v38 = vld [vmem:[%s903_s20 + $0x10] sm:$0xff] }
 0x34d   : > { %v2127_v20 = vpop.eup %1481 }
 0x34e   : > { %v2129_v11 = vpop.eup %1483  ;;  %814 = vadd.xlane.f32.xlu0 %v813_v44  ;;  %v807_v14 = vadd.f32 %v2127_v20, %v2121_v42 }
 0x34f   : > { %v2131_v49 = vpop.eup %1485  ;;  %v848_v40 = vpack.c.bf16 %v2121_v42, %v2129_v11  ;;  %v906_v42 = vld [vmem:[%s903_s20 + $0x20] sm:$0xff] }
 0x350   : > { %v2135_v43 = vpop.eup %1487  ;;  %v804_v15 = vadd.f32 %v2131_v49, %v2129_v11  ;;  %v849_v54 = vpack.c.bf16 %v2127_v20, %v2131_v49  ;;  %v908_v11 = vld [vmem:[%s903_s20 + $0x40] sm:$0xff] }
 0x351   : > { %v2143_v56 = vpop.eup %1489  ;;  %v911_v49 = vpack.c.bf16 %v908_v11, %v908_v11 }
 0x352   : > { %v2145_v60 = vpop.eup %1491  ;;  %808 = vadd.xlane.f32.xlu0 %v807_v14  ;;  %805 = vadd.xlane.f32.xlu1 %v804_v15  ;;  %v801_v63 = vadd.f32 %v2143_v56, %v2135_v43 }
 0x353   : > { %v2147_v6 = vpop.eup %1493  ;;  %v846_v7 = vpack.c.bf16 %v2135_v43, %v2145_v60 }
 0x354   : > { %v798_v1 = vadd.f32 %v2147_v6, %v2145_v60  ;;  %v847_v17 = vpack.c.bf16 %v2143_v56, %v2147_v6  ;;  %v913_v56 = vld [vmem:[#allocation4 + $0x8] sm:$0xff]  ;;  %v914_v6 = vld [vmem:[#allocation4 + $0x10] sm:$0xff] }
 0x356   : > { %802 = vadd.xlane.f32.xlu0 %v801_v63  ;;  %799 = vadd.xlane.f32.xlu1 %v798_v1 }
 0x3b9   : > { %v842_v2 = vpop.xlane.xlu1 %841 }
 0x3ba   : > { %1495 = vrcp.f32 %v842_v2 }
 0x3bd   : > { %v836_v3 = vpop.xlane.xlu1 %835 }
 0x3c1   : > { %v830_v9 = vpop.xlane.xlu1 %829 }
 0x3c3   : > { %v845_v8 = vpop.xlane.xlu0 %844 }
 0x3c4   : > { %1497 = vrcp.f32 %v845_v8 }
 0x3c5   : > { %1499 = vrcp.f32 %v836_v3  ;;  %v824_v32 = vpop.xlane.xlu1 %823 }
 0x3c7   : > { %v839_v28 = vpop.xlane.xlu0 %838  ;;  %v1496_v24 = vpop.eup %1495 }
 0x3c8   : > { %1501 = vrcp.f32 %v839_v28 }
 0x3c9   : > { %1503 = vrcp.f32 %v830_v9 }
 0x3cb   : > { %v833_v36 = vpop.xlane.xlu0 %832  ;;  %v818_v25 = vpop.xlane.xlu1 %817 }
 0x3cc   : > { %1505 = vrcp.f32 %v833_v36 }
 0x3cd   : > { %1507 = vrcp.f32 %v824_v32 }
 0x3cf   : > { %v827_v19 = vpop.xlane.xlu0 %826 }
 0x3d0   : > { %1509 = vrcp.f32 %v827_v19 }
 0x3d1   : > { %v1498_v44 = vpop.eup %1497  ;;  %1511 = vrcp.f32 %v818_v25  ;;  %v915_v25 = vld [vmem:[#allocation4 + $0x18] sm:$0xff] }
 0x3d2   : > { %v885_v14 = vpack.c.bf16 %v1498_v44, %v1496_v24  ;;  %v1500_v63 = vpop.eup %1499 }
 0x3d3   : > { %v821_v15 = vpop.xlane.xlu0 %820  ;;  %v812_v1 = vpop.xlane.xlu1 %811 }
 0x3d4   : > { %1513 = vrcp.f32 %v821_v15  ;;  %v901_v2 = vmul.bf16 %v885_v14, %v861_v10  ;;  %v900_v3 = vmul.bf16 %v885_v14, %v860_v34  ;;  %v916_v15 = vld [vmem:[#allocation4 + $0x20] sm:$0xff] }
 0x3d5   : > { %v1502_v8 = vpop.eup %1501  ;;  %1515 = vrcp.f32 %v812_v1  ;;  %v917_v1 = vld [vmem:[#allocation4 + $0x28] sm:$0xff] }
 0x3d6   : > { %922 = vmatprep.subr.bf16.mxu1 %v901_v2  ;;  %v884_v9 = vpack.c.bf16 %v1502_v8, %v1500_v63  ;;  %v1504_v36 = vpop.eup %1503  ;;  %v918_v8 = vld [vmem:[#allocation4 + $0x30] sm:$0xff] }
 0x3d7   : > { %v815_v28 = vpop.xlane.xlu0 %814  ;;  %923 = vmatpush1.bf16.msra.mxu1 %v900_v3 }
 0x3d8   : > { %1517 = vrcp.f32 %v815_v28  ;;  %v899_v32 = vmul.bf16 %v884_v9, %v859_v50  ;;  %v898_v58 = vmul.bf16 %v884_v9, %v858_v21 }
 0x3d9   : > { %v1506_v39 = vpop.eup %1505 }
 0x3da   : > { %924 = vmatprep.subr.bf16.mxu1 %v899_v32  ;;  %v883_v55 = vpack.c.bf16 %v1506_v39, %v1504_v36  ;;  %v1508_v10 = vpop.eup %1507  ;;  %v919_v36 = vld [vmem:[#allocation4 + $0x38] sm:$0xff]  ;;  %v920_v39 = vld [vmem:[#allocation4 + $0x40] sm:$0xff] }
 0x3db   : > { %v809_v37 = vpop.xlane.xlu0 %808  ;;  %925 = vmatpush1.bf16.msra.mxu1 %v898_v58  ;;  %v806_v34 = vpop.xlane.xlu1 %805 }
 0x3dc   : > { %1519 = vrcp.f32 %v809_v37  ;;  %v897_v19 = vmul.bf16 %v883_v55, %v857_v16  ;;  %v896_v26 = vmul.bf16 %v883_v55, %v856_v0 }
 0x3dd   : > { %v1510_v47 = vpop.eup %1509  ;;  %1521 = vrcp.f32 %v806_v34  ;;  %v921_v34 = vld [vmem:[#allocation4 + $0x48] sm:$0xff] }
 0x3de   : > { %926 = vmatprep.subr.bf16.mxu1 %v897_v19  ;;  %v882_v41 = vpack.c.bf16 %v1510_v47, %v1508_v10  ;;  %v1512_v50 = vpop.eup %1511 }
 0x3df   : > { %v803_v46 = vpop.xlane.xlu0 %802  ;;  %927 = vmatpush1.bf16.msra.mxu1 %v896_v26  ;;  %v800_v21 = vpop.xlane.xlu1 %799 }
 0x3e0   : > { %1523 = vrcp.f32 %v803_v46  ;;  %v895_v24 = vmul.bf16 %v882_v41, %v855_v59  ;;  %v894_v52 = vmul.bf16 %v882_v41, %v854_v53 }
 0x3e1   : > { %v1514_v61 = vpop.eup %1513  ;;  %1525 = vrcp.f32 %v800_v21 }
 0x3e2   : > { %928 = vmatprep.subr.bf16.mxu1 %v895_v24  ;;  %v881_v51 = vpack.c.bf16 %v1514_v61, %v1512_v50  ;;  %v1516_v22 = vpop.eup %1515 }
 0x3e3   : > { %929 = vmatpush1.bf16.msra.mxu1 %v894_v52 }
 0x3e4   : > { %v893_v0 = vmul.bf16 %v881_v51, %v853_v4  ;;  %v892_v16 = vmul.bf16 %v881_v51, %v852_v18 }
 0x3e5   : > { %v1518_v31 = vpop.eup %1517 }
 0x3e6   : > { %930 = vmatprep.subr.bf16.mxu1 %v893_v0  ;;  %v880_v48 = vpack.c.bf16 %v1518_v31, %v1516_v22 }
 0x3e7   : > { %931 = vmatpush1.bf16.msra.mxu1 %v892_v16 }
 0x3e8   : > { %v891_v33 = vmul.bf16 %v880_v48, %v851_v27  ;;  %v890_v45 = vmul.bf16 %v880_v48, %v850_v13  ;;  %v909_v13 = vpack.c.bf16 %v905_v38, %v904_v5  ;;  %v907_v27 = vld [vmem:[%s903_s20 + $0x30] sm:$0xff] }
 0x3e9   : > { %v1520_v53 = vpop.eup %1519  ;;  %v910_v20 = vpack.c.bf16 %v907_v27, %v906_v42 }
 0x3ea   : > { %v1522_v59 = vpop.eup %1521  ;;  %932 = vmatprep.subr.bf16.mxu1 %v891_v33 }
 0x3eb   : > { %933 = vmatpush1.bf16.msra.mxu1 %v890_v45  ;;  %v879_v62 = vpack.c.bf16 %v1520_v53, %v1522_v59 }
 0x3ed   : > { %v1524_v23 = vpop.eup %1523  ;;  %v889_v29 = vmul.bf16 %v879_v62, %v849_v54  ;;  %v888_v30 = vmul.bf16 %v879_v62, %v848_v40  ;;  %v912_v40 = vld [vmem:[#allocation4] sm:$0xff] }
 0x3ee   : > { %v1526_v18 = vpop.eup %1525 }
 0x3ef   : > { %934 = vmatprep.subr.bf16.mxu1 %v889_v29  ;;  %v878_v4 = vpack.c.bf16 %v1524_v23, %v1526_v18 }
 0x3f0   : > { %935 = vmatpush1.bf16.msra.mxu1 %v888_v30 }
 0x3f1   : > { %v887_v35 = vmul.bf16 %v878_v4, %v847_v17  ;;  %v886_v12 = vmul.bf16 %v878_v4, %v846_v7 }
 0x3f3   : > { %936 = vmatprep.subr.bf16.mxu1 %v887_v35 }
 0x3f4   : > { %937 = vmatpush1.bf16.msra.mxu1 %v886_v12 }
 0x3f7   : > { %955 = vmatmul.mubr.bf16.vlgmr.msra.gmra.mxu1 %v909_v13 }
 0x3f8   : > { %964 = vmatprep.mubr.bf16.mxu1 %v1693_v57 }
 0x3ff   : > { %965 = vmatmul.mubr.bf16.gmra.mxu1 %v910_v20 }
 0x400   : > { %974 = vmatprep.mubr.bf16.mxu1 %v1693_v57 }
 0x407   : > { %975 = vmatmul.mubr.bf16.gmra.mxu1 %v911_v49 }
 0x4b7   : > { %v956_v54 = vpop.f32.mrf.mxu1 }
 0x4b8   : > { %v983_v43 = vadd.f32 %v956_v54, %v912_v40 }
 0x4b9   : > { %v958_v60 = vpop.f32.mrf.mxu1 }
 0x4ba   : > { %993 = vst [vmem:[#allocation4] sm:$0xff] %v983_v43  ;;  %v984_v7 = vadd.f32 %v958_v60, %v913_v56 }
 0x4bb   : > { %v960_v17 = vpop.f32.mrf.mxu1 }
 0x4bc   : > { %994 = vst [vmem:[#allocation4 + $0x8] sm:$0xff] %v984_v7  ;;  %v985_v44 = vadd.f32 %v960_v17, %v914_v6 }
 0x4bd   : > { %v962_v14 = vpop.f32.mrf.mxu1 }
 0x4be   : > { %995 = vst [vmem:[#allocation4 + $0x10] sm:$0xff] %v985_v44  ;;  %v986_v63 = vadd.f32 %v962_v14, %v915_v25 }
 0x4bf   : > { %v966_v57 = vpop.f32.mrf.mxu1 }
 0x4c0   : > { %996 = vst [vmem:[#allocation4 + $0x18] sm:$0xff] %v986_v63  ;;  %v987_v2 = vadd.f32 %v966_v57, %v916_v15 }
 0x4c1   : > { %v968_v3 = vpop.f32.mrf.mxu1 }
 0x4c2   : > { %997 = vst [vmem:[#allocation4 + $0x20] sm:$0xff] %v987_v2  ;;  %v988_v9 = vadd.f32 %v968_v3, %v917_v1 }
 0x4c3   : > { %v970_v28 = vpop.f32.mrf.mxu1 }
 0x4c4   : > { %998 = vst [vmem:[#allocation4 + $0x28] sm:$0xff] %v988_v9  ;;  %v989_v32 = vadd.f32 %v970_v28, %v918_v8 }
 0x4c5   : > { %v972_v58 = vpop.f32.mrf.mxu1 }
 0x4c6   : > { %999 = vst [vmem:[#allocation4 + $0x30] sm:$0xff] %v989_v32  ;;  %v990_v55 = vadd.f32 %v972_v58, %v919_v36 }
 0x4c7   : > { %v976_v37 = vpop.f32.mrf.mxu1 }
 0x4c8   : > { %1000 = vst [vmem:[#allocation4 + $0x38] sm:$0xff] %v990_v55  ;;  %v991_v10 = vadd.f32 %v976_v37, %v920_v39 }
 0x4c9   : > { %v978_v19 = vpop.f32.mrf.mxu1  ;;  %1006 = sbr.rel (%p1315_p3) target bundleno = 1475 (0x5c3), region = 60 }
 0x4ca   : > { %1001 = vst [vmem:[#allocation4 + $0x40] sm:$0xff] %v991_v10  ;;  %v992_v26 = vadd.f32 %v978_v19, %v921_v34 }
 0x4cb   : > { %v980_v47 = vpop.f32.mrf.mxu1 }
 0x4cc   : > { %1002 = vst [vmem:[#allocation4 + $0x48] sm:$0xff] %v992_v26 }
 0x4cd   : > { %v981_v41 = vpop.f32.mrf.mxu1 }
 0x4ce   : > { %v1694_v50 = vmov 0   ;;  %v1028_v24 = vlaneseq  ;;  %v1066_v52 = vld [vmem:[%s2338_s5 + $0x10] sm:$0xff]  ;;  %v1064_v61 = vld [vmem:[%s2338_s5] sm:$0xff]  ;;  %v1067_v22 = vld [vmem:[%s2338_s5 + $0x18] sm:$0xff]  ;;  %vm1088_vm4 = vcmask 261120  }
 0x4cf   : > { %1127 = vmatprep.mubr.bf16.mxu0 %v1694_v50  ;;  %1137 = vmatprep.mubr.bf16.mxu1 %v1694_v50  ;;  %v1065_v0 = vld [vmem:[%s2338_s5 + $0x8] sm:$0xff]  ;;  %v1022_v48 = vld [vmem:[#allocation4 + $0x28] sm:$0xff]  ;;  %v1024_v33 = vld [vmem:[#allocation4 + $0x38] sm:$0xff] }
 0x4d0   : > { %1528 = vset.pattern.permute.xlu1 %v1694_v50  ;;  %1527 = vset.pattern.permute.xlu0 %v1694_v50  ;;  %v1029_v51 = vshrl.u32 %v1028_v24, 7  ;;  %v2222_v53 = vld [vmem:[%s1859_s14 + $0x28] sm:$0xff]  ;;  %v2225_v59 = vld [vmem:[%s1859_s14 + $0x38] sm:$0xff]  ;;  %v1021_v62 = vld [vmem:[#allocation4 + $0x20] sm:$0xff] }
 0x4d1   : > { %1080 = vperm.xlu1 %1528, %v1066_v52   ;;  %1070 = vperm.xlu0 %1527, %v1064_v61   ;;  %v1023_v23 = vld [vmem:[#allocation4 + $0x30] sm:$0xff]  ;;  %v1018_v29 = vld [vmem:[#allocation4 + $0x8] sm:$0xff]  ;;  %v1020_v4 = vld [vmem:[#allocation4 + $0x18] sm:$0xff] }
 0x4d2   : > { %v1034_v16 = vsub.s32 1, %v1029_v51  ;;  %v1030_v31 = vsub.s32 0, %v1029_v51  ;;  %v1017_v5 = vld [vmem:[#allocation4] sm:$0xff]  ;;  %v1019_v38 = vld [vmem:[#allocation4 + $0x10] sm:$0xff]  ;;  %v2232_v13 = vld [vmem:[%s1859_s14 + $0x8] sm:$0xff] }
 0x4d3   : > { %v1016_v46 = vld [vmem:[#allocation4 + $0x40] ss:$8 sm:$0x3]  ;;  %v1011_v35 = vld [vmem:[%s1859_s14 + $0x20] sm:$0xff]  ;;  %v1048_v36 = vld [vmem:[%s2337_s4 + $0x10] sm:$0xff] }
 0x4d4   : > { %v1025_v21 = vadd.f32 1e-09, %v1016_v46  ;;  %v2229_v12 = vld [vmem:[%s1859_s14 + $0x30] sm:$0xff]  ;;  %v2235_v49 = vld [vmem:[%s1859_s14 + $0x18] sm:$0xff]  ;;  %v1007_v40 = vld [vmem:[%s1859_s14] sm:$0xff] }
 0x4d5   : > { %1085 = vperm.xlu1 %1528, %v1067_v22   ;;  %1075 = vperm.xlu0 %1527, %v1065_v0   ;;  %v2239_v54 = vld [vmem:[%s1859_s14 + $0x10] sm:$0xff]  ;;  %v1046_v8 = vld [vmem:[%s2337_s4] sm:$0xff]  ;;  %v1047_v28 = vld [vmem:[%s2337_s4 + $0x8] sm:$0xff] }
 0x4d6   : > { %1529 = vrcp.f32 %v1025_v21  ;;  %v1049_v32 = vld [vmem:[%s2337_s4 + $0x18] sm:$0xff]  ;;  %v1050_v58 = vpack.c.bf16 %v1047_v28, %v1046_v8 }
 0x4d7   : > { %v1051_v39 = vpack.c.bf16 %v1049_v32, %v1048_v36 }
 0x4e3   : > { %v1530_v45 = vpop.eup %1529 }
 0x4e4   : > { %v1035_v30 = vrot.slane %v1530_v45, %v1034_v16  ;;  %v1031_v18 = vrot.slane %v1530_v45, %v1030_v31 }
 0x4e6   : > { %v1043_v42 = vmul.f32 %v1035_v30, %v1022_v48  ;;  %v1045_v27 = vmul.f32 %v1035_v30, %v1024_v33  ;;  %v1042_v20 = vmul.f32 %v1031_v18, %v1021_v62  ;;  %v1044_v11 = vmul.f32 %v1031_v18, %v1023_v23 }
 0x4e7   : > { %v1039_v56 = vmul.f32 %v1035_v30, %v1018_v29  ;;  %v1041_v43 = vmul.f32 %v1035_v30, %v1020_v4  ;;  %v1038_v60 = vmul.f32 %v1031_v18, %v1017_v5  ;;  %v1040_v6 = vmul.f32 %v1031_v18, %v1019_v38 }
 0x4e8   : > { %v1057_v7 = vsub.f32 %v2222_v53, %v1043_v42  ;;  %v1059_v17 = vsub.f32 %v2225_v59, %v1045_v27  ;;  %v1056_v25 = vsub.f32 %v1011_v35, %v1042_v20  ;;  %v1058_v44 = vsub.f32 %v2229_v12, %v1044_v11 }
 0x4e9   : > { %v1053_v14 = vsub.f32 %v2232_v13, %v1039_v56  ;;  %v1055_v15 = vsub.f32 %v2235_v49, %v1041_v43  ;;  %v1052_v63 = vsub.f32 %v1007_v40, %v1038_v60  ;;  %v1054_v57 = vsub.f32 %v2239_v54, %v1040_v6 }
 0x4ea   : > { %v1063_v1 = vpack.c.bf16 %v1059_v17, %v1057_v7  ;;  %v1062_v2 = vpack.c.bf16 %v1058_v44, %v1056_v25 }
 0x4eb   : > { %v1061_v3 = vpack.c.bf16 %v1055_v15, %v1053_v14  ;;  %v1060_v9 = vpack.c.bf16 %v1054_v57, %v1052_v63 }
 0x4ec   : > { %1107 = vmatprep.subr.bf16.mxu0 %v1063_v1  ;;  %1326 = vmatprep.subr.bf16.mxu1 %v1063_v1 }
 0x4ed   : > { %1108 = vmatpush1.bf16.msra.mxu0 %v1062_v2  ;;  %1328 = vmatpush1.bf16.msra.mxu1 %v1062_v2 }
 0x4ee   : > { %1109 = vmatprep.subr.bf16.mxu0 %v1061_v3  ;;  %1327 = vmatprep.subr.bf16.mxu1 %v1061_v3 }
 0x4f1   : > { %1110 = vmatpush1.bf16.msra.mxu0 %v1060_v9  ;;  %1329 = vmatpush1.bf16.msra.mxu1 %v1060_v9 }
 0x4f4   : > { %1316 = vmatmul.mubr.msk.bf16.vlgmr.msra.gmra.mxu0 %vm1088_vm4, %v1050_v58  ;;  %1317 = vmatmul.mubr.msk.bf16.vlgmr.msra.gmra.mxu1 %vm1088_vm4, %v1051_v39 }
 0x54c   : > { %v1081_v55 = vpop.permute.xlu1 %1080  ;;  %v1071_v37 = vpop.permute.xlu0 %1070 }
 0x550   : > { %v1086_v0 = vpop.permute.xlu1 %1085  ;;  %v1076_v16 = vpop.permute.xlu0 %1075 }
 0x5b4   : > { %v1129_v34 = vpop.f32.mrf.mxu0  ;;  %v1139_v10 = vpop.f32.mrf.mxu1 }
 0x5b5   : > { %v1130_v19 = vadd.f32 %v1129_v34, %v1071_v37  ;;  %v1140_v26 = vadd.f32 %v1139_v10, %v1081_v55 }
 0x5b6   : > { %v1131_v47 = vpop.f32.mrf.mxu0  ;;  %v1141_v41 = vpop.f32.mrf.mxu1 }
 0x5b7   : > { %v1148_v46 = vmax.f32 %v1130_v19, 0.0  ;;  %v1152_v21 = vmax.f32 %v1140_v26, 0.0  ;;  %v1132_v50 = vadd.f32 %v1131_v47, %v1071_v37  ;;  %v1142_v24 = vadd.f32 %v1141_v41, %v1081_v55 }
 0x5b8   : > { %v1133_v52 = vpop.f32.mrf.mxu0  ;;  %v1143_v61 = vpop.f32.mrf.mxu1 }
 0x5b9   : > { %v1156_v51 = vadd.f32 %v1148_v46, %v1007_v40  ;;  %v1160_v22 = vadd.f32 %v1152_v21, %v1011_v35  ;;  %v1149_v31 = vmax.f32 %v1132_v50, 0.0  ;;  %v1153_v48 = vmax.f32 %v1142_v24, 0.0 }
 0x5ba   : > { %v1134_v33 = vadd.f32 %v1133_v52, %v1076_v16  ;;  %v1144_v45 = vadd.f32 %v1143_v61, %v1086_v0  ;;  %v1135_v62 = vpop.f32.mrf.mxu0  ;;  %v1145_v23 = vpop.f32.mrf.mxu1 }
 0x5bb   : > { %1164 = vst [vmem:[%s1869_s1] sm:$0xff] %v1156_v51  ;;  %1168 = vst [vmem:[%s1869_s1 + $0x20] sm:$0xff] %v1160_v22  ;;  %v1157_v29 = vadd.f32 %v1149_v31, %v2232_v13  ;;  %v1161_v30 = vadd.f32 %v1153_v48, %v2222_v53  ;;  %v1136_v18 = vadd.f32 %v1135_v62, %v1076_v16 }
 0x5bc   : > { %v1146_v4 = vadd.f32 %v1145_v23, %v1086_v0  ;;  %v1150_v5 = vmax.f32 %v1134_v33, 0.0  ;;  %v1154_v38 = vmax.f32 %v1144_v45, 0.0 }
 0x5bd   : > { %1165 = vst [vmem:[%s1869_s1 + $0x8] sm:$0xff] %v1157_v29  ;;  %1169 = vst [vmem:[%s1869_s1 + $0x28] sm:$0xff] %v1161_v30  ;;  %v1151_v35 = vmax.f32 %v1136_v18, 0.0 }
 0x5be   : > { %v1155_v42 = vmax.f32 %v1146_v4, 0.0  ;;  %v1158_v27 = vadd.f32 %v1150_v5, %v2239_v54  ;;  %v1162_v20 = vadd.f32 %v1154_v38, %v2229_v12 }
 0x5bf   : > { %v1159_v11 = vadd.f32 %v1151_v35, %v2235_v49 }
 0x5c0   : > { %v1163_v13 = vadd.f32 %v1155_v42, %v2225_v59  ;;  %1166 = vst [vmem:[%s1869_s1 + $0x10] sm:$0xff] %v1158_v27  ;;  %1170 = vst [vmem:[%s1869_s1 + $0x30] sm:$0xff] %v1162_v20 }
 0x5c1   : > { %1167 = vst [vmem:[%s1869_s1 + $0x18] sm:$0xff] %v1159_v11 }
 0x5c2   : > { %1171 = vst [vmem:[%s1869_s1 + $0x38] sm:$0xff] %v1163_v13 }
 0x5c3 PF: > { %s1325_s26 = sshll.u32 %s1673_s25, 10  ;;  %s1186_s12 = sshll.u32 %s1869_s1, 4  ;;  %s2280_s12 = int_to_ptr.vmem [resolvable:$true] %s1186_s12 }
 0x5c4   : > { %s2277_s10 = scalar_lea.hbm %s2339_s6, %s1325_s26  ;;  %s1173_s13 = scalar_lea.sflag [#allocation7], %s1855_s17 }
 0x5c5   : > { %s1585_s14 = scalar_lea.vmem %s2280_s12, 1024  ;;  %p2361_p8 = scmp.ne.s32.totalorder %s2350_s11, 0 }
 0x5c6   : > { %p1586_p7 = scmp.ne.s32.totalorder %s2280_s12, %s1585_s14  ;;  %s1695_s16 = smov [#allocation10]  }
 0x5c7   : > { %s1589_s19 = sshll.u32 %s1695_s16, 4  ;;  %s1590_s19 = int_to_ptr.vmem [resolvable:$false] %s1589_s19 }
 0x5c8   : > { %p1587_p9 = pnand %p1586_p7, %p2361_p8  ;;  %s1591_s25 = scalar_lea.vmem %s1590_s19, 2048 }
 0x5c9   : > { %p1592_p13 = scmp.lt.s32.totalorder %s2280_s12, %s1590_s19  ;;  %p1593_p0 = scmp.lt.s32.totalorder %s1591_s25, %s1585_s14 }
 0x5ca   : > { %p1588_p12 = pneg %p1587_p9 }
 0x5cb   : > { %p1594_p2 = por %p1593_p0, %p1592_p13 }
 0x5cd   : > { %p1595_p4 = pnand %p1594_p2, %p1588_p12 }
 0x5cf   : > { %1598 = shalt.err (!%p1595_p4)
}
 0x5d0   : > { %s1599_s1 = scalar_lea.hbm %s2277_s10, 1024  ;;  %s1603_s20 = scalar_lea.hbm %s2339_s6, 2048 }
 0x5d1   : > { %p1600_p6 = scmp.ne.s32.totalorder %s2277_s10, %s1599_s1  ;;  %p1604_p5 = scmp.lt.s32.totalorder %s2277_s10, %s2339_s6 }
 0x5d2   : > { %p1605_p1 = scmp.lt.s32.totalorder %s1603_s20, %s1599_s1 }
 0x5d3   : > { %p1601_p10 = pnand %p1600_p6, %p2361_p8 }
 0x5d4   : > { %p1606_p3 = por %p1605_p1, %p1604_p5 }
 0x5d5   : > { %p1602_p11 = pneg %p1601_p10 }
 0x5d7   : > { %p1607_p7 = pnand %p1606_p3, %p1602_p11 }
 0x5d9   : > { %1610 = shalt.err (!%p1607_p7)
}
 0x5da   : > { %s1696_s26 = smov 256   ;;  %s1697_s8 = smov 16  }
 0x5db   : > { %1336 = dma.vmem_to_hbm [thread:$0]  (%p2361_p8), %s2280_s12, 1024, %s2277_s10, %s1173_s13, %s1696_s26, %s1696_s26, %s1697_s8  }
 0x5dc PF: > { %s2362_s24 = sld [smem:[#allocation15_spill]]  ;;  %p1353_p9 = scmp.ge.s32.totalorder %s1685_s28, 2 }
 0x5dd   : > { %s1201_s14 = sand.u32 1, %s1657_s21  }
 0x5de   : > { %s1202_s16 = scalar_lea.sflag [#allocation7], %s1201_s14 }
 0x5e2   : > { %p2363_p12 = scmp.ne.s32.totalorder %s2362_s24, 0 }
 0x5e4   : > { %p1347_p13 = pnand %p1353_p9, %p2363_p12 }
 0x5e6   : > { %p1348_p0 = pneg %p1347_p13 }
 0x5e8   : > { %1652 = dma.done.wait (%p1348_p0), %s1202_s16, 1024  }
 0x5e9   : > { %1654 = vsyncadd (%p1348_p0), %s1202_s16, 4294966272  ;;  %s23_s28 = sadd.s32 1, %s1685_s28   ;;  %s2364_s24 = sld [smem:[#allocation14_spill]] }
 0x5ea   : > { %p20_p2 = scmp.ge.s32.totalorder %s23_s28, 6   ;;  %s2365_s26 = sld [smem:[#allocation16_spill]] }
 0x5eb   : > { %s2366_s21 = smov %s1661_s22  ;;  %s2367_s22 = smov %s1665_s23 }
 0x5ec   : > { %s2368_s23 = smov %s1850_s15  ;;  %s2369_s25 = smov %s1681_s27 }
 0x5ed   : > { %s2370_s27 = smov %s2376_s29  ;;  %22 = sbr.rel (!%p20_p2) target bundleno = 10 (0xa), region = 104 }
 0x5f2   :  { %1207 = vsyncpa [#allocation6], 1 }
 0x5f3   :  { %1209 = vsyncpa [#allocation6 + $0x1], 1 }
 0x5f4   :  { %1210 = vsyncpa [#allocation9], 1 }
 0x5f5   :  { %1211 = vsyncpa [#allocation7], 1 }
 0x5f6   :  { %1213 = vsyncpa [#allocation7 + $0x1], 1 }

</bundles_post_ra>
